<compile_context>
chip_gen: v7x
topology: tpu7x:2x2x1
jax: 0.10.0
libtpu: 0.0.40
codegen_flags: <defaults>
</compile_context>

<pallas_src>
import math

import jax
import jax.numpy as jnp
from jax import lax
from jax.experimental import pallas as pl
from jax.experimental.pallas import tpu as pltpu


# ---------------------------------------------------------------------------
# Pass 1: conv (bf16 MXU, f32 accumulate) + single-pass BN partial statistics.
# ---------------------------------------------------------------------------
def conv_stats_kernel(x_ref, w_ref, conv_ref, sum_ref, sumsq_ref, xp_ref):
    # x_ref   : (1, H, W, C)  one image, NHWC (channels on the lane axis)
    # w_ref   : (9*C, C)      conv weights, rows ordered (kh, kw, Cin), bf16
    # conv_ref: (1, H*W, C)   conv output for this image, bf16
    # sum_ref, sumsq_ref: (1, 1, C) per-image partial BN statistics, f32
    # xp_ref  : VMEM scratch (H+2, W+2, C), f32 padded image
    _, H, W, C = x_ref.shape
    HW = H * W

    # Zero-pad the 1-pixel border directly in the VMEM scratch (no concatenate
    # copies).  The border is re-zeroed every grid step (four thin stores) so the
    # kernel stays correct when the "parallel" grid axis is sharded across
    # TensorCores: each core has its own scratch instance, so a zero-once at
    # program_id==0 scheme would leave the other core's border uninitialized.
    zrow = jnp.zeros((1, W + 2, C), jnp.float32)
    zcol = jnp.zeros((H + 2, 1, C), jnp.float32)
    xp_ref[0:1, :, :] = zrow
    xp_ref[H + 1:H + 2, :, :] = zrow
    xp_ref[:, 0:1, :] = zcol
    xp_ref[:, W + 1:W + 2, :] = zcol
    xp_ref[1:H + 1, 1:W + 1, :] = x_ref[0]

    if C < 64:
        # Small C: per-tap contraction depth (C) is tiny, so stack the nine taps on
        # the contraction axis and run ONE MXU matmul with depth 9*C.
        taps = [xp_ref[dh:dh + H, dw:dw + W, :]
                for dh in range(3) for dw in range(3)]
        patches = jnp.concatenate(taps, axis=-1).reshape(HW, 9 * C)
        acc = jnp.dot(patches.astype(jnp.bfloat16), w_ref[...],
                      preferred_element_type=jnp.float32)            # (HW, C) f32
    else:
        # Large C: nine accumulated per-tap matmuls -- identical MXU FLOPs with a
        # ~1x working set (one tap live at a time, no (HW, 9C) patches buffer).
        acc = jnp.zeros((HW, C), jnp.float32)
        for t in range(9):
            dh, dw = t // 3, t % 3
            tap = xp_ref[dh:dh + H, dw:dw + W, :].reshape(HW, C).astype(jnp.bfloat16)
            acc = acc + jnp.dot(tap, w_ref[t * C:(t + 1) * C, :],
                                preferred_element_type=jnp.float32)

    conv_ref[0] = acc.astype(conv_ref.dtype)                 # bf16 intermediate
    # Single pass over acc for BN partial stats (global fold happens in the wrapper,
    # so BN statistics stay GLOBAL even though the kernel is tiled per image).
    sum_ref[0] = jnp.sum(acc, axis=0, keepdims=True)          # (1, C) f32
    sumsq_ref[0] = jnp.sum(acc * acc, axis=0, keepdims=True)  # (1, C) f32


# ---------------------------------------------------------------------------
# Pass 2: fused BN affine (global stats) + ReLU + residual add, lane-dense tiles.
# ---------------------------------------------------------------------------
def bn_relu_add_kernel(conv_ref, x_ref, scale_ref, shift_ref, o_ref):
    # conv_ref: (tile_r, L) bf16; x_ref/o_ref: (tile_r, L) f32; scale/shift: (1, L) f32
    bn = conv_ref[...].astype(jnp.float32) * scale_ref[...] + shift_ref[...]
    o_ref[...] = jnp.maximum(bn, 0.0) + x_ref[...]


def _vmem_limit_bytes():
    # ~3/4 of physical VMEM: ~48 MiB on v7x (64 MiB phys), ~96 MiB on v5e/v6e (128 MiB).
    try:
        phys = int(pltpu.get_tpu_info().vmem_capacity_bytes)
    except Exception:
        phys = 64 * 1024 * 1024
    return (phys * 3) // 4


def resblock_forward(x_nchw, w_oihw, gamma, beta, *, eps=1e-5):
    """x_nchw: (N, C, H, W) float32. Returns (N, C, H, W) float32."""
    N, C, H, W = x_nchw.shape
    M = N * H * W

    # Wrapper-side layout plumbing (NCHW -> NHWC so channels sit on the MXU
    # contraction / lane axis).  When embedding into an NHWC-native model these
    # two transposes (and the final one) disappear entirely.
    x_nhwc = jnp.transpose(x_nchw, (0, 2, 3, 1)).astype(jnp.float32)
    # (Cout, Cin, kh, kw) -> (kh, kw, Cin, Cout) -> (9*Cin, Cout); bf16 MXU input.
    w_r = jnp.transpose(w_oihw, (2, 3, 1, 0)).reshape(9 * C, C).astype(jnp.bfloat16)

    vmem_limit = _vmem_limit_bytes()
    cparams = pltpu.CompilerParams(
        dimension_semantics=("parallel",), vmem_limit_bytes=vmem_limit)

    # --- Pass 1: conv + per-image BN partial stats --------------------------------
    # NOTE: at large H, W, C this pass should be tiled over (N, H // band) row bands
    # with a 1-row halo so each block fits v7x's 64 MiB VMEM and the input DMA
    # pipelines behind the MXU; at the shapes used here whole-image blocks fit easily.
    conv, psum, psumsq = pl.pallas_call(
        conv_stats_kernel,
        grid=(N,),
        in_specs=[
            pl.BlockSpec((1, H, W, C), lambda n: (n, 0, 0, 0)),
            pl.BlockSpec((9 * C, C), lambda n: (0, 0)),
        ],
        out_specs=[
            pl.BlockSpec((1, H * W, C), lambda n: (n, 0, 0)),
            pl.BlockSpec((1, 1, C), lambda n: (n, 0, 0)),
            pl.BlockSpec((1, 1, C), lambda n: (n, 0, 0)),
        ],
        out_shape=[
            jax.ShapeDtypeStruct((N, H * W, C), jnp.bfloat16),
            jax.ShapeDtypeStruct((N, 1, C), jnp.float32),
            jax.ShapeDtypeStruct((N, 1, C), jnp.float32),
        ],
        scratch_shapes=[pltpu.VMEM((H + 2, W + 2, C), jnp.float32)],
        compiler_params=cparams,
    )(x_nhwc, w_r)

    # --- Tiny per-channel fold of the GLOBAL batch statistics (plain JAX) ---------
    # var = E[x^2] - mean^2 on f32 sums is fine at these scales; for very large
    # N*H*W, switch to mean-centered per-tile partials + Chan's combination.
    cnt = jnp.float32(M)
    mean = jnp.sum(psum, axis=0).reshape(C) / cnt
    var = jnp.maximum(jnp.sum(psumsq, axis=0).reshape(C) / cnt - mean * mean, 0.0)
    scale_c = gamma.astype(jnp.float32) * lax.rsqrt(var + eps)
    shift_c = beta.astype(jnp.float32) - mean * scale_c

    # --- Pass 2: BN affine + ReLU + residual, lane-dense row tiles -----------------
    # For C < 128, view (M, C) as (M/k, k*C) with k*C a multiple of 128 so the
    # output stores are unmasked full-lane writes.  These are contiguous reshapes
    # (no data movement); the per-channel affine is simply replicated k times.
    if C % 128 == 0:
        k = 1
    else:
        k = 128 // math.gcd(C, 128)
        if M % k != 0:
            k = 1          # correct fallback (masked stores), no resource hazard
    Mk = M // k
    L = k * C

    conv_flat = conv.reshape(Mk, L)       # bf16
    x_flat = x_nhwc.reshape(Mk, L)        # f32 residual
    scale = jnp.tile(scale_c.reshape(1, C), (1, k))
    shift = jnp.tile(shift_c.reshape(1, C), (1, k))

    # Row-tile size: big enough to amortize per-grid-step overhead, small enough to
    # stay well inside the VMEM budget (conv bf16 + x f32 + out f32, double-buffered).
    row_bytes = L * (2 + 4 + 4)
    cap_rows = max(8, (((vmem_limit // 4) // row_bytes) // 8) * 8)
    tile_r = min(Mk, 512, cap_rows)
    grid2 = pl.cdiv(Mk, tile_r)           # ragged last tile handled by Pallas masking

    out_flat = pl.pallas_call(
        bn_relu_add_kernel,
        grid=(grid2,),
        in_specs=[
            pl.BlockSpec((tile_r, L), lambda i: (i, 0)),
            pl.BlockSpec((tile_r, L), lambda i: (i, 0)),
            pl.BlockSpec((1, L), lambda i: (0, 0)),
            pl.BlockSpec((1, L), lambda i: (0, 0)),
        ],
        out_specs=pl.BlockSpec((tile_r, L), lambda i: (i, 0)),
        out_shape=jax.ShapeDtypeStruct((Mk, L), jnp.float32),
        compiler_params=cparams,
    )(conv_flat, x_flat, scale, shift)

    # Layout plumbing back to PyTorch's NCHW lives in the wrapper, not the kernel.
    return jnp.transpose(out_flat.reshape(N, H, W, C), (0, 3, 1, 2))


def resblock_reference(x_nchw, w_oihw, gamma, beta):
    """Pure-JAX f32 reference mirroring the PyTorch forward (training-mode BN)."""
    conv = lax.conv_general_dilated(
        x_nchw, w_oihw, window_strides=(1, 1), padding="SAME",
        dimension_numbers=("NCHW", "OIHW", "NCHW"))
    mean = jnp.mean(conv, axis=(0, 2, 3), keepdims=True)
    var = jnp.mean((conv - mean) ** 2, axis=(0, 2, 3), keepdims=True)
    xhat = (conv - mean) * lax.rsqrt(var + 1e-5)
    bn = xhat * gamma.reshape(1, -1, 1, 1) + beta.reshape(1, -1, 1, 1)
    return jnp.maximum(bn, 0.0) + x_nchw


if __name__ == "__main__":
    key = jax.random.PRNGKey(0)
    N, C, H, W = 2, 4, 16, 16
    k_x, k_w = jax.random.split(key)

    x = jax.random.normal(k_x, (N, C, H, W), dtype=jnp.float32)

    # Deterministic parameter init matching the PyTorch __init__:
    # kaiming_normal_(nonlinearity='relu'): std = sqrt(2 / fan_in), fan_in = Cin*3*3
    fan_in = C * 3 * 3
    w = jax.random.normal(k_w, (C, C, 3, 3), dtype=jnp.float32) * jnp.sqrt(2.0 / fan_in)
    gamma = jnp.full((C,), 0.5, dtype=jnp.float32)   # constant_(weight, 0.5)
    beta = jnp.zeros((C,), dtype=jnp.float32)        # zeros_(bias)

    out = jax.block_until_ready(resblock_forward(x, w, gamma, beta))
    ref = jax.block_until_ready(resblock_reference(x, w, gamma, beta))

    assert out.shape == (N, C, H, W)
    # bf16 MXU inputs + bf16 conv intermediate vs. an all-f32 reference -> relaxed tol.
    max_err = float(jnp.max(jnp.abs(out - ref)))
    assert jnp.allclose(out, ref, atol=3e-2, rtol=3e-2), max_err
    print("KERNEL_OK")
</pallas_src>

<mosaic_0001>
module attributes {stable_mosaic.version = 11 : i64} {
  func.func @conv_stats_kernel(%arg0: i32, %arg1: memref<1x16x16x4xf32, #tpu.memory_space<vmem>>, %arg2: memref<36x4xbf16, #tpu.memory_space<vmem>>, %arg3: memref<1x256x4xbf16, #tpu.memory_space<vmem>>, %arg4: memref<1x1x4xf32, #tpu.memory_space<vmem>>, %arg5: memref<1x1x4xf32, #tpu.memory_space<vmem>>, %arg6: memref<18x18x4xf32, #tpu.memory_space<vmem>>) attributes {dimension_semantics = [#tpu.dimension_semantics<parallel>], iteration_bounds = array<i64: 2>, scalar_prefetch = 0 : i64, scratch_operands = 1 : i64, tpu.core_type = #tpu.core_type<tc>, window_params = [{transform_indices = @transform_0, window_bounds = array<i64: 1, 16, 16, 4>}, {pipeline_mode = #tpu.pipeline_mode<synchronous>, transform_indices = @transform_1, window_bounds = array<i64: 36, 4>}, {transform_indices = @transform_2, window_bounds = array<i64: 1, 256, 4>}, {transform_indices = @transform_3, window_bounds = array<i64: 1, 1, 4>}, {transform_indices = @transform_4, window_bounds = array<i64: 1, 1, 4>}]} {
    %cst = arith.constant 0.000000e+00 : f32
    %0 = vector.broadcast %cst : f32 to vector<1x18x4xf32>
    %cst_0 = arith.constant 0.000000e+00 : f32
    %1 = vector.broadcast %cst_0 : f32 to vector<18x1x4xf32>
    %c0 = arith.constant 0 : index
    %c0_1 = arith.constant 0 : index
    %c0_2 = arith.constant 0 : index
    %2 = vector.load %arg6[%c0, %c0_1, %c0_2] : memref<18x18x4xf32, #tpu.memory_space<vmem>>, vector<1x18x4xf32>
    tpu.vector_store %arg6[%c0, %c0_1, %c0_2], %0 {strides = array<i32>} : memref<18x18x4xf32, #tpu.memory_space<vmem>>, vector<1x18x4xf32>,
    %c17 = arith.constant 17 : index
    %c0_3 = arith.constant 0 : index
    %c0_4 = arith.constant 0 : index
    %3 = vector.load %arg6[%c17, %c0_3, %c0_4] : memref<18x18x4xf32, #tpu.memory_space<vmem>>, vector<1x18x4xf32>
    tpu.vector_store %arg6[%c17, %c0_3, %c0_4], %0 {strides = array<i32>} : memref<18x18x4xf32, #tpu.memory_space<vmem>>, vector<1x18x4xf32>,
    %c0_5 = arith.constant 0 : index
    %c0_6 = arith.constant 0 : index
    %c0_7 = arith.constant 0 : index
    %4 = vector.load %arg6[%c0_5, %c0_6, %c0_7] : memref<18x18x4xf32, #tpu.memory_space<vmem>>, vector<18x1x4xf32>
    tpu.vector_store %arg6[%c0_5, %c0_6, %c0_7], %1 {strides = array<i32>} : memref<18x18x4xf32, #tpu.memory_space<vmem>>, vector<18x1x4xf32>,
    %c0_8 = arith.constant 0 : index
    %c17_9 = arith.constant 17 : index
    %c0_10 = arith.constant 0 : index
    %5 = vector.load %arg6[%c0_8, %c17_9, %c0_10] : memref<18x18x4xf32, #tpu.memory_space<vmem>>, vector<18x1x4xf32>
    tpu.vector_store %arg6[%c0_8, %c17_9, %c0_10], %1 {strides = array<i32>} : memref<18x18x4xf32, #tpu.memory_space<vmem>>, vector<18x1x4xf32>,
    %c0_11 = arith.constant 0 : index
    %c0_12 = arith.constant 0 : index
    %c0_13 = arith.constant 0 : index
    %c0_14 = arith.constant 0 : index
    %6 = vector.load %arg1[%c0_11, %c0_12, %c0_13, %c0_14] : memref<1x16x16x4xf32, #tpu.memory_space<vmem>>, vector<1x16x16x4xf32>
    %7 = vector.shape_cast %6 : vector<1x16x16x4xf32> to vector<16x16x4xf32>
    %c1 = arith.constant 1 : index
    %c1_15 = arith.constant 1 : index
    %c0_16 = arith.constant 0 : index
    %8 = vector.load %arg6[%c1, %c1_15, %c0_16] : memref<18x18x4xf32, #tpu.memory_space<vmem>>, vector<16x16x4xf32>
    tpu.vector_store %arg6[%c1, %c1_15, %c0_16], %7 {strides = array<i32>} : memref<18x18x4xf32, #tpu.memory_space<vmem>>, vector<16x16x4xf32>,
    %c0_17 = arith.constant 0 : index
    %c0_18 = arith.constant 0 : index
    %c0_19 = arith.constant 0 : index
    %9 = vector.load %arg6[%c0_17, %c0_18, %c0_19] : memref<18x18x4xf32, #tpu.memory_space<vmem>>, vector<16x16x4xf32>
    %c0_20 = arith.constant 0 : index
    %c1_21 = arith.constant 1 : index
    %c0_22 = arith.constant 0 : index
    %10 = vector.load %arg6[%c0_20, %c1_21, %c0_22] : memref<18x18x4xf32, #tpu.memory_space<vmem>>, vector<16x16x4xf32>
    %c0_23 = arith.constant 0 : index
    %c2 = arith.constant 2 : index
    %c0_24 = arith.constant 0 : index
    %11 = vector.load %arg6[%c0_23, %c2, %c0_24] : memref<18x18x4xf32, #tpu.memory_space<vmem>>, vector<16x16x4xf32>
    %c1_25 = arith.constant 1 : index
    %c0_26 = arith.constant 0 : index
    %c0_27 = arith.constant 0 : index
    %12 = vector.load %arg6[%c1_25, %c0_26, %c0_27] : memref<18x18x4xf32, #tpu.memory_space<vmem>>, vector<16x16x4xf32>
    %c1_28 = arith.constant 1 : index
    %c1_29 = arith.constant 1 : index
    %c0_30 = arith.constant 0 : index
    %13 = vector.load %arg6[%c1_28, %c1_29, %c0_30] : memref<18x18x4xf32, #tpu.memory_space<vmem>>, vector<16x16x4xf32>
    %c1_31 = arith.constant 1 : index
    %c2_32 = arith.constant 2 : index
    %c0_33 = arith.constant 0 : index
    %14 = vector.load %arg6[%c1_31, %c2_32, %c0_33] : memref<18x18x4xf32, #tpu.memory_space<vmem>>, vector<16x16x4xf32>
    %c2_34 = arith.constant 2 : index
    %c0_35 = arith.constant 0 : index
    %c0_36 = arith.constant 0 : index
    %15 = vector.load %arg6[%c2_34, %c0_35, %c0_36] : memref<18x18x4xf32, #tpu.memory_space<vmem>>, vector<16x16x4xf32>
    %c2_37 = arith.constant 2 : index
    %c1_38 = arith.constant 1 : index
    %c0_39 = arith.constant 0 : index
    %16 = vector.load %arg6[%c2_37, %c1_38, %c0_39] : memref<18x18x4xf32, #tpu.memory_space<vmem>>, vector<16x16x4xf32>
    %c2_40 = arith.constant 2 : index
    %c2_41 = arith.constant 2 : index
    %c0_42 = arith.constant 0 : index
    %17 = vector.load %arg6[%c2_40, %c2_41, %c0_42] : memref<18x18x4xf32, #tpu.memory_space<vmem>>, vector<16x16x4xf32>
    %18 = tpu.concatenate %9, %10, %11, %12, %13, %14, %15, %16, %17 in 2 : vector<16x16x4xf32>, vector<16x16x4xf32>, vector<16x16x4xf32>, vector<16x16x4xf32>, vector<16x16x4xf32>, vector<16x16x4xf32>, vector<16x16x4xf32>, vector<16x16x4xf32>, vector<16x16x4xf32> -> vector<16x16x36xf32>
    %19 = vector.shape_cast %18 : vector<16x16x36xf32> to vector<256x36xf32>
    %20 = arith.truncf %19 : vector<256x36xf32> to vector<256x36xbf16>
    %c0_43 = arith.constant 0 : index
    %c0_44 = arith.constant 0 : index
    %21 = vector.load %arg2[%c0_43, %c0_44] : memref<36x4xbf16, #tpu.memory_space<vmem>>, vector<36x4xbf16>
    %cst_45 = arith.constant dense<0.000000e+00> : vector<256x4xf32>
    %22 = tpu.matmul %20, %21, %cst_45 {dimension_numbers = #tpu.dot_dimension_numbers<[1], [0], [0], [1], [0, 0, 1, 1], [], []>} : vector<256x36xbf16>, vector<36x4xbf16>, vector<256x4xf32> -> vector<256x4xf32>
    %23 = arith.truncf %22 : vector<256x4xf32> to vector<256x4xbf16>
    %c0_46 = arith.constant 0 : index
    %c0_47 = arith.constant 0 : index
    %c0_48 = arith.constant 0 : index
    %24 = vector.load %arg3[%c0_46, %c0_47, %c0_48] : memref<1x256x4xbf16, #tpu.memory_space<vmem>>, vector<1x256x4xbf16>
    %25 = vector.shape_cast %24 : vector<1x256x4xbf16> to vector<256x4xbf16>
    %26 = vector.shape_cast %23 : vector<256x4xbf16> to vector<1x256x4xbf16>
    tpu.vector_store %arg3[%c0_46, %c0_47, %c0_48], %26 {strides = array<i32>} : memref<1x256x4xbf16, #tpu.memory_space<vmem>>, vector<1x256x4xbf16>,
    %cst_49 = arith.constant dense<0.000000e+00> : vector<4xf32>
    %27 = vector.multi_reduction <add>, %22, %cst_49 [0] : vector<256x4xf32> to vector<4xf32>
    %28 = vector.shape_cast %27 : vector<4xf32> to vector<1x4xf32>
    %c0_50 = arith.constant 0 : index
    %c0_51 = arith.constant 0 : index
    %c0_52 = arith.constant 0 : index
    %29 = vector.load %arg4[%c0_50, %c0_51, %c0_52] : memref<1x1x4xf32, #tpu.memory_space<vmem>>, vector<1x1x4xf32>
    %30 = vector.shape_cast %29 : vector<1x1x4xf32> to vector<1x4xf32>
    %31 = vector.shape_cast %28 : vector<1x4xf32> to vector<1x1x4xf32>
    tpu.vector_store %arg4[%c0_50, %c0_51, %c0_52], %31 {strides = array<i32>} : memref<1x1x4xf32, #tpu.memory_space<vmem>>, vector<1x1x4xf32>,
    %32 = arith.mulf %22, %22 : vector<256x4xf32>
    %cst_53 = arith.constant dense<0.000000e+00> : vector<4xf32>
    %33 = vector.multi_reduction <add>, %32, %cst_53 [0] : vector<256x4xf32> to vector<4xf32>
    %34 = vector.shape_cast %33 : vector<4xf32> to vector<1x4xf32>
    %c0_54 = arith.constant 0 : index
    %c0_55 = arith.constant 0 : index
    %c0_56 = arith.constant 0 : index
    %35 = vector.load %arg5[%c0_54, %c0_55, %c0_56] : memref<1x1x4xf32, #tpu.memory_space<vmem>>, vector<1x1x4xf32>
    %36 = vector.shape_cast %35 : vector<1x1x4xf32> to vector<1x4xf32>
    %37 = vector.shape_cast %34 : vector<1x4xf32> to vector<1x1x4xf32>
    tpu.vector_store %arg5[%c0_54, %c0_55, %c0_56], %37 {strides = array<i32>} : memref<1x1x4xf32, #tpu.memory_space<vmem>>, vector<1x1x4xf32>,
    return
  }
  func.func @transform_0(%arg0: i32) -> (i32, i32, i32, i32) {
    %c0_i32 = arith.constant 0 : i32
    %c0_i32_0 = arith.constant 0 : i32
    %c0_i32_1 = arith.constant 0 : i32
    %c0_i32_2 = arith.constant 0 : i32
    return %arg0, %c0_i32, %c0_i32_0, %c0_i32_1 : i32, i32, i32, i32
  }
  func.func @transform_1(%arg0: i32) -> (i32, i32) {
    %c0_i32 = arith.constant 0 : i32
    %c0_i32_0 = arith.constant 0 : i32
    %c0_i32_1 = arith.constant 0 : i32
    return %c0_i32, %c0_i32_0 : i32, i32
  }
  func.func @transform_2(%arg0: i32) -> (i32, i32, i32) {
    %c0_i32 = arith.constant 0 : i32
    %c0_i32_0 = arith.constant 0 : i32
    %c0_i32_1 = arith.constant 0 : i32
    return %arg0, %c0_i32, %c0_i32_0 : i32, i32, i32
  }
  func.func @transform_3(%arg0: i32) -> (i32, i32, i32) {
    %c0_i32 = arith.constant 0 : i32
    %c0_i32_0 = arith.constant 0 : i32
    %c0_i32_1 = arith.constant 0 : i32
    return %arg0, %c0_i32, %c0_i32_0 : i32, i32, i32
  }
  func.func @transform_4(%arg0: i32) -> (i32, i32, i32) {
    %c0_i32 = arith.constant 0 : i32
    %c0_i32_0 = arith.constant 0 : i32
    %c0_i32_1 = arith.constant 0 : i32
    return %arg0, %c0_i32, %c0_i32_0 : i32, i32, i32
  }
}

</mosaic_0001>

<bundles_post_ra>
// kernel: tpu_custom_call.1
= control target key start
LH: loop header
LB: loop body
LE: loop exit
PB: predicated region body
PF: predicated region fallthrough
CT: control target
= control target key end

     0   :  { %10 = vsyncpa [#allocation4], 0  ;;  %s4865_s0 = inlined_call_operand.vmem [shape: f32[2,16,16,4], index: 0, kind: input, shape index: {}]   ;;  %s4866_s1 = inlined_call_operand.vmem [shape: bf16[36,4], index: 1, kind: input, shape index: {}]   ;;  %s4867_s2 = inlined_call_operand.vmem [shape: bf16[2,256,4], index: 2, kind: output, shape index: {0}]   ;;  %s4868_s3 = inlined_call_operand.hbm [shape: f32[2,1,4], index: 3, kind: output, shape index: {1}]   ;;  %s4869_s4 = inlined_call_operand.hbm [shape: f32[2,1,4], index: 4, kind: output, shape index: {2}]  }
   0x1   :  { %12 = vsyncpa [#allocation4 + $0x1], 0 }
   0x2   :  { %13 = vsyncpa [#allocation6], 0 }
   0x3   :  { %15 = vsyncpa [#allocation6 + $0x1], 0  ;;  %s3635_s15 = smov 0   ;;  %s3637_s16 = smov 0  }
   0x4   :  { %s3639_s17 = smov 0   ;;  %s3641_s18 = smov 0  }
   0x5 LB: > { %s3656_s19 = sadd.s32 4294967295, %s3597_s18   ;;  %s2634_s20 = sadd.s32 4294967294, %s3597_s18   ;;  %s3597_s18 = sphi %s3641_s18, %s4931_s18   ;;  %s3593_s17 = sphi %s3639_s17, %s4930_s17   ;;  %s3589_s16 = sphi %s3637_s16, %s4929_s16   ;;  %s3585_s15 = sphi %s3635_s15, %s4928_s15  }
   0x6   : > { %s3660_s21 = sadd.s32 1, %s3597_s18   ;;  %s101_s22 = sadd.s32 1, %s3593_s17 }
   0x7   : > { %s98_s23 = ssub.s32 %s3597_s18, %s3660_s21  ;;  %p111_p0 = scmp.ne.s32.totalorder %s3593_s17, %s3589_s16 }
   0x8   : > { %p99_p1 = scmp.eq.s32.totalorder %s98_s23, 0  ;;  %p112_p2 = scmp.eq.s32.totalorder %s3656_s19, 1 }
   0x9   : > { %p117_p3 = scmp.ne.s32.totalorder %s3589_s16, %s3585_s15  ;;  %p118_p4 = scmp.eq.s32.totalorder %s2634_s20, 1 }
   0xa   : > { %s3671_s24 = scalar_select %p99_p1, %s3593_s17, %s101_s22  }
   0xb   : > { %p3673_p5 = por %p112_p2, %p111_p0  ;;  %p3677_p6 = por %p118_p4, %p117_p3 }
   0xc   : > { %p2637_p7 = scmp.ge.s32.totalorder %s3597_s18, 1  ;;  %p173_p8 = scmp.lt.s32.totalorder %s3597_s18, 3 }
   0xe   : > { %p174_p9 = pnand %p2637_p7, %p173_p8 }
  0x10   : > { %177 = sbr.rel (%p174_p9) target bundleno = 698 (0x2ba), region = 28 }
  0x17   : > { %vm218_vm0 = vcmask 31744   ;;  %vm221_vm1 = vcmask 25600   ;;  %vm227_vm2 = vcmask 24576   ;;  %p207_p10 = scmp.lt.s32.totalorder %s3656_s19, 1  ;;  %v3599_v0 = vmov 0.0   ;;  %s3600_s6 = smov 4  }
  0x18   : > { %219 = vst.msk [vmem:[#allocation2] sm:$0xff] %vm218_vm0, %v3599_v0  ;;  %220 = vst.msk [vmem:[#allocation2 + $0x8] sm:$0xff] %vm218_vm0, %v3599_v0  ;;  %s3601_s7 = smov 8   ;;  %s3602_s8 = smov 12   ;;  %vm1990_vm3 = vcmask 1041408   ;;  %vm1674_vm4 = vcmask 64512  }
  0x19   : > { %222 = vst.msk [vmem:[#allocation2 + $0x10] sm:$0x3] %vm221_vm1, %v3599_v0  ;;  %226 = vst.msk [vmem:[#allocation2 + $0x1a8] sm:$0x3] %vm221_vm1, %v3599_v0  ;;  %s3726_s27 = scalar_select %p207_p10, %s3656_s19, 1  ;;  %vm1707_vm5 = vcmask 97280  }
  0x1a   : > { %224 = vst.msk [vmem:[#allocation2 + $0x198] sm:$0xff] %vm218_vm0, %v3599_v0  ;;  %225 = vst.msk [vmem:[#allocation2 + $0x1a0] sm:$0xff] %vm218_vm0, %v3599_v0  ;;  %s3603_s11 = smov 16   ;;  %s3604_s14 = smov 20   ;;  %vm1740_vm6 = vcmask 130048   ;;  %vm1773_vm7 = vcmask 162816  }
  0x1b   : > { %229 = vst.msk [vmem:[#allocation2 + $0x18] sm:$0x1] %vm227_vm2, %v3599_v0  ;;  %230 = vst.msk [vmem:[#allocation2 + $0x30] sm:$0x1] %vm227_vm2, %v3599_v0  ;;  %s2697_s28 = sshll.u32 %s3726_s27, 8  ;;  %s3605_s23 = smov 24  }
  0x1c   : > { %231 = vst.msk [vmem:[#allocation2 + $0x48] sm:$0x1] %vm227_vm2, %v3599_v0  ;;  %232 = vst.msk [vmem:[#allocation2 + $0x60] sm:$0x1] %vm227_vm2, %v3599_v0  ;;  %s3733_s5 = scalar_lea.vmem %s4865_s0, %s2697_s28  ;;  %s3606_s28 = smov 28   ;;  %vm1806_vm8 = vcmask 195584  }
  0x1d   : > { %233 = vst.msk [vmem:[#allocation2 + $0x78] sm:$0x1] %vm227_vm2, %v3599_v0  ;;  %234 = vst.msk [vmem:[#allocation2 + $0x90] sm:$0x1] %vm227_vm2, %v3599_v0  ;;  %v266_v1 = vld [vmem:[%s3733_s5 + $0x10] sm:$0xff]  ;;  %v267_v2 = vld [vmem:[%s3733_s5 + $0x18] sm:$0xff] }
  0x1e   : > { %235 = vst.msk [vmem:[#allocation2 + $0xa8] sm:$0x1] %vm227_vm2, %v3599_v0  ;;  %236 = vst.msk [vmem:[#allocation2 + $0xc0] sm:$0x1] %vm227_vm2, %v3599_v0  ;;  %v264_v3 = vld [vmem:[%s3733_s5] sm:$0xff]  ;;  %v265_v4 = vld [vmem:[%s3733_s5 + $0x8] sm:$0xff] }
  0x1f   : > { %237 = vst.msk [vmem:[#allocation2 + $0xd8] sm:$0x1] %vm227_vm2, %v3599_v0  ;;  %238 = vst.msk [vmem:[#allocation2 + $0xf0] sm:$0x1] %vm227_vm2, %v3599_v0  ;;  %v268_v5 = vld [vmem:[%s3733_s5 + $0x20] sm:$0xff]  ;;  %v269_v6 = vld [vmem:[%s3733_s5 + $0x28] sm:$0xff] }
  0x20   : > { %239 = vst.msk [vmem:[#allocation2 + $0x108] sm:$0x1] %vm227_vm2, %v3599_v0  ;;  %240 = vst.msk [vmem:[#allocation2 + $0x120] sm:$0x1] %vm227_vm2, %v3599_v0  ;;  %v361_v7 = vld [vmem:[#allocation2 + $0x1] sm:$0xff]  ;;  %v362_v8 = vld [vmem:[#allocation2 + $0x9] sm:$0xff] }
  0x21   : > { %241 = vst.msk [vmem:[#allocation2 + $0x138] sm:$0x1] %vm227_vm2, %v3599_v0  ;;  %242 = vst.msk [vmem:[#allocation2 + $0x150] sm:$0x1] %vm227_vm2, %v3599_v0  ;;  %v270_v9 = vld [vmem:[%s3733_s5 + $0x30] sm:$0xff]  ;;  %v2849_v10 = vpack.i.bf16 %v362_v8, %v361_v7  ;;  %v271_v11 = vld [vmem:[%s3733_s5 + $0x38] sm:$0xff] }
  0x22   : > { %243 = vst.msk [vmem:[#allocation2 + $0x168] sm:$0x1] %vm227_vm2, %v3599_v0  ;;  %244 = vst.msk [vmem:[#allocation2 + $0x180] sm:$0x1] %vm227_vm2, %v3599_v0  ;;  %v272_v12 = vld [vmem:[%s3733_s5 + $0x40] sm:$0xff]  ;;  %v273_v13 = vld [vmem:[%s3733_s5 + $0x48] sm:$0xff] }
  0x23   : > { %247 = vst.msk [vmem:[#allocation2 + $0x29] sm:$0x1] %vm227_vm2, %v3599_v0  ;;  %248 = vst.msk [vmem:[#allocation2 + $0x41] sm:$0x1] %vm227_vm2, %v3599_v0  ;;  %v274_v14 = vld [vmem:[%s3733_s5 + $0x50] sm:$0xff]  ;;  %v275_v15 = vld [vmem:[%s3733_s5 + $0x58] sm:$0xff]  ;;  %2850 = vrot.lane.b32.xlu0 %v2849_v10, %s3600_s6 }
  0x24   : > { %249 = vst.msk [vmem:[#allocation2 + $0x59] sm:$0x1] %vm227_vm2, %v3599_v0  ;;  %250 = vst.msk [vmem:[#allocation2 + $0x71] sm:$0x1] %vm227_vm2, %v3599_v0  ;;  %v276_v16 = vld [vmem:[%s3733_s5 + $0x60] sm:$0xff]  ;;  %v277_v17 = vld [vmem:[%s3733_s5 + $0x68] sm:$0xff] }
  0x25   : > { %251 = vst.msk [vmem:[#allocation2 + $0x89] sm:$0x1] %vm227_vm2, %v3599_v0  ;;  %252 = vst.msk [vmem:[#allocation2 + $0xa1] sm:$0x1] %vm227_vm2, %v3599_v0  ;;  %v278_v18 = vld [vmem:[%s3733_s5 + $0x70] sm:$0xff]  ;;  %v279_v19 = vld [vmem:[%s3733_s5 + $0x78] sm:$0xff] }
  0x26   : > { %253 = vst.msk [vmem:[#allocation2 + $0xb9] sm:$0x1] %vm227_vm2, %v3599_v0  ;;  %254 = vst.msk [vmem:[#allocation2 + $0xd1] sm:$0x1] %vm227_vm2, %v3599_v0  ;;  %v280_v20 = vld [vmem:[%s3733_s5 + $0x80] sm:$0xff]  ;;  %v281_v21 = vld [vmem:[%s3733_s5 + $0x88] sm:$0xff] }
  0x27   : > { %255 = vst.msk [vmem:[#allocation2 + $0xe9] sm:$0x1] %vm227_vm2, %v3599_v0  ;;  %256 = vst.msk [vmem:[#allocation2 + $0x101] sm:$0x1] %vm227_vm2, %v3599_v0  ;;  %v282_v22 = vld [vmem:[%s3733_s5 + $0x90] sm:$0xff]  ;;  %v283_v23 = vld [vmem:[%s3733_s5 + $0x98] sm:$0xff] }
  0x28   : > { %257 = vst.msk [vmem:[#allocation2 + $0x119] sm:$0x1] %vm227_vm2, %v3599_v0  ;;  %258 = vst.msk [vmem:[#allocation2 + $0x131] sm:$0x1] %vm227_vm2, %v3599_v0  ;;  %v284_v24 = vld [vmem:[%s3733_s5 + $0xa0] sm:$0xff]  ;;  %v285_v25 = vld [vmem:[%s3733_s5 + $0xa8] sm:$0xff] }
  0x29   : > { %259 = vst.msk [vmem:[#allocation2 + $0x149] sm:$0x1] %vm227_vm2, %v3599_v0  ;;  %260 = vst.msk [vmem:[#allocation2 + $0x161] sm:$0x1] %vm227_vm2, %v3599_v0  ;;  %v286_v35 = vld [vmem:[%s3733_s5 + $0xb0] sm:$0xff]  ;;  %v287_v36 = vld [vmem:[%s3733_s5 + $0xb8] sm:$0xff] }
  0x2a   : > { %261 = vst.msk [vmem:[#allocation2 + $0x179] sm:$0x1] %vm227_vm2, %v3599_v0  ;;  %262 = vst.msk [vmem:[#allocation2 + $0x191] sm:$0x1] %vm227_vm2, %v3599_v0  ;;  %v288_v50 = vld [vmem:[%s3733_s5 + $0xc0] sm:$0xff]  ;;  %v289_v51 = vld [vmem:[%s3733_s5 + $0xc8] sm:$0xff] }
  0x2b   : > { %246 = vst.msk [vmem:[#allocation2 + $0x11] sm:$0x1] %vm227_vm2, %v3599_v0  ;;  %263 = vst.msk [vmem:[#allocation2 + $0x1a9] sm:$0x1] %vm227_vm2, %v3599_v0  ;;  %v290_v52 = vld [vmem:[%s3733_s5 + $0xd0] sm:$0xff]  ;;  %v291_v53 = vld [vmem:[%s3733_s5 + $0xd8] sm:$0xff] }
  0x2c   : > { %228 = vst.msk [vmem:[#allocation2] sm:$0x1] %vm227_vm2, %v3599_v0  ;;  %245 = vst.msk [vmem:[#allocation2 + $0x198] sm:$0x1] %vm227_vm2, %v3599_v0  ;;  %v292_v54 = vld [vmem:[%s3733_s5 + $0xe0] sm:$0xff]  ;;  %v293_v55 = vld [vmem:[%s3733_s5 + $0xe8] sm:$0xff] }
  0x2d   : > { %299 = vst.msk [vmem:[#allocation2 + $0x31] sm:$0xff] %vm218_vm0, %v266_v1  ;;  %300 = vst.msk [vmem:[#allocation2 + $0x39] sm:$0xff] %vm218_vm0, %v267_v2  ;;  %s3607_s29 = smov 32   ;;  %vm1839_vm9 = vcmask 228352   ;;  %vm1872_vm10 = vcmask 261120   ;;  %vm1941_vm11 = vcmask 293888  }
  0x2e   : > { %297 = vst.msk [vmem:[#allocation2 + $0x19] sm:$0xff] %vm218_vm0, %v264_v3  ;;  %298 = vst.msk [vmem:[#allocation2 + $0x21] sm:$0xff] %vm218_vm0, %v265_v4  ;;  %s2698_s30 = sshll.u32 %s3726_s27, 7  ;;  %vm2283_vm12 = vcmask 27648   ;;  %s4779_s27 = sand.u32 1, %s3589_s16  }
  0x2f   : > { %301 = vst.msk [vmem:[#allocation2 + $0x49] sm:$0xff] %vm218_vm0, %v268_v5  ;;  %302 = vst.msk [vmem:[#allocation2 + $0x51] sm:$0xff] %vm218_vm0, %v269_v6  ;;  %s200_s9 = scalar_lea.vmem [#allocation3], %s4779_s27 }
  0x30   : > { %303 = vst.msk [vmem:[#allocation2 + $0x61] sm:$0xff] %vm218_vm0, %v270_v9  ;;  %304 = vst.msk [vmem:[#allocation2 + $0x69] sm:$0xff] %vm218_vm0, %v271_v11  ;;  %s2513_s10 = sshll.u32 %s200_s9, 4  ;;  %s4791_s10 = int_to_ptr.vmem [resolvable:$true] %s2513_s10 }
  0x31   : > { %305 = vst.msk [vmem:[#allocation2 + $0x79] sm:$0xff] %vm218_vm0, %v272_v12  ;;  %306 = vst.msk [vmem:[#allocation2 + $0x81] sm:$0xff] %vm218_vm0, %v273_v13 }
  0x32   : > { %307 = vst.msk [vmem:[#allocation2 + $0x91] sm:$0xff] %vm218_vm0, %v274_v14  ;;  %308 = vst.msk [vmem:[#allocation2 + $0x99] sm:$0xff] %vm218_vm0, %v275_v15  ;;  %v393_v14 = vld [vmem:[#allocation2 + $0x2] sm:$0xff]  ;;  %v394_v15 = vld [vmem:[#allocation2 + $0xa] sm:$0xff] }
  0x33   : > { %309 = vst.msk [vmem:[#allocation2 + $0xa9] sm:$0xff] %vm218_vm0, %v276_v16  ;;  %310 = vst.msk [vmem:[#allocation2 + $0xb1] sm:$0xff] %vm218_vm0, %v277_v17  ;;  %v2929_v17 = vpack.i.bf16 %v394_v15, %v393_v14 }
  0x34   : > { %311 = vst.msk [vmem:[#allocation2 + $0xc1] sm:$0xff] %vm218_vm0, %v278_v18  ;;  %312 = vst.msk [vmem:[#allocation2 + $0xc9] sm:$0xff] %vm218_vm0, %v279_v19  ;;  %v365_v26 = vld [vmem:[#allocation2 + $0x31] sm:$0xff]  ;;  %v366_v27 = vld [vmem:[#allocation2 + $0x39] sm:$0xff] }
  0x35   : > { %313 = vst.msk [vmem:[#allocation2 + $0xd9] sm:$0xff] %vm218_vm0, %v280_v20  ;;  %314 = vst.msk [vmem:[#allocation2 + $0xe1] sm:$0xff] %vm218_vm0, %v281_v21  ;;  %v363_v28 = vld [vmem:[#allocation2 + $0x19] sm:$0xff]  ;;  %v3780_v29 = vpack.i.bf16 %v366_v27, %v365_v26  ;;  %v364_v30 = vld [vmem:[#allocation2 + $0x21] sm:$0xff] }
  0x36   : > { %315 = vst.msk [vmem:[#allocation2 + $0xf1] sm:$0xff] %vm218_vm0, %v282_v22  ;;  %316 = vst.msk [vmem:[#allocation2 + $0xf9] sm:$0xff] %vm218_vm0, %v283_v23  ;;  %v367_v31 = vld [vmem:[#allocation2 + $0x49] sm:$0xff]  ;;  %v368_v32 = vld [vmem:[#allocation2 + $0x51] sm:$0xff]  ;;  %v3782_v33 = vpack.i.bf16 %v364_v30, %v363_v28 }
  0x37   : > { %317 = vst.msk [vmem:[#allocation2 + $0x109] sm:$0xff] %vm218_vm0, %v284_v24  ;;  %318 = vst.msk [vmem:[#allocation2 + $0x111] sm:$0xff] %vm218_vm0, %v285_v25  ;;  %v369_v34 = vld [vmem:[#allocation2 + $0x61] sm:$0xff]  ;;  %2860 = vrot.lane.b32.xlu1 %v3780_v29, %s3600_s6  ;;  %v3788_v37 = vpack.i.bf16 %v368_v32, %v367_v31  ;;  %v370_v38 = vld [vmem:[#allocation2 + $0x69] sm:$0xff] }
  0x38   : > { %319 = vst.msk [vmem:[#allocation2 + $0x121] sm:$0xff] %vm218_vm0, %v286_v35  ;;  %320 = vst.msk [vmem:[#allocation2 + $0x129] sm:$0xff] %vm218_vm0, %v287_v36  ;;  %2855 = vrot.lane.b32.xlu0 %v3782_v33, %s3600_s6  ;;  %v3794_v39 = vpack.i.bf16 %v370_v38, %v369_v34  ;;  %v371_v40 = vld [vmem:[#allocation2 + $0x79] sm:$0xff]  ;;  %v372_v41 = vld [vmem:[#allocation2 + $0x81] sm:$0xff] }
  0x39   : > { %v373_v42 = vld [vmem:[#allocation2 + $0x91] sm:$0xff]  ;;  %v374_v43 = vld [vmem:[#allocation2 + $0x99] sm:$0xff]  ;;  %v3798_v45 = vpack.i.bf16 %v372_v41, %v371_v40  ;;  %321 = vst.msk [vmem:[#allocation2 + $0x139] sm:$0xff] %vm218_vm0, %v288_v50  ;;  %322 = vst.msk [vmem:[#allocation2 + $0x141] sm:$0xff] %vm218_vm0, %v289_v51 }
  0x3a   : > { %v375_v44 = vld [vmem:[#allocation2 + $0xa9] sm:$0xff]  ;;  %v376_v46 = vld [vmem:[#allocation2 + $0xb1] sm:$0xff]  ;;  %v3802_v49 = vpack.i.bf16 %v374_v43, %v373_v42  ;;  %323 = vst.msk [vmem:[#allocation2 + $0x151] sm:$0xff] %vm218_vm0, %v290_v52  ;;  %324 = vst.msk [vmem:[#allocation2 + $0x159] sm:$0xff] %vm218_vm0, %v291_v53 }
  0x3b   : > { %2865 = vrot.lane.b32.xlu1 %v3788_v37, %s3600_s6  ;;  %v377_v47 = vld [vmem:[#allocation2 + $0xc1] sm:$0xff]  ;;  %v378_v48 = vld [vmem:[#allocation2 + $0xc9] sm:$0xff]  ;;  %325 = vst.msk [vmem:[#allocation2 + $0x169] sm:$0xff] %vm218_vm0, %v292_v54  ;;  %326 = vst.msk [vmem:[#allocation2 + $0x171] sm:$0xff] %vm218_vm0, %v293_v55  ;;  %v3818_v56 = vpack.i.bf16 %v376_v46, %v375_v44 }
  0x3c   : > { %2870 = vrot.lane.b32.xlu0 %v3794_v39, %s3600_s6  ;;  %v3822_v57 = vpack.i.bf16 %v378_v48, %v377_v47  ;;  %v379_v58 = vld [vmem:[#allocation2 + $0xd9] sm:$0xff]  ;;  %v380_v59 = vld [vmem:[#allocation2 + $0xe1] sm:$0xff]  ;;  %v399_v24 = vld [vmem:[#allocation2 + $0x4a] sm:$0xff] }
  0x3d   : > { %v381_v60 = vld [vmem:[#allocation2 + $0xf1] sm:$0xff]  ;;  %v382_v61 = vld [vmem:[#allocation2 + $0xf9] sm:$0xff]  ;;  %v3826_v62 = vpack.i.bf16 %v380_v59, %v379_v58  ;;  %v396_v19 = vld [vmem:[#allocation2 + $0x22] sm:$0xff] }
  0x3e   : > { %v3830_v63 = vpack.i.bf16 %v382_v61, %v381_v60  ;;  %v383_v0 = vld [vmem:[#allocation2 + $0x109] sm:$0xff]  ;;  %v384_v1 = vld [vmem:[#allocation2 + $0x111] sm:$0xff]  ;;  %v395_v18 = vld [vmem:[#allocation2 + $0x1a] sm:$0xff] }
  0x3f   : > { %2875 = vrot.lane.b32.xlu1 %v3798_v45, %s3600_s6  ;;  %v385_v2 = vld [vmem:[#allocation2 + $0x121] sm:$0xff]  ;;  %v386_v3 = vld [vmem:[#allocation2 + $0x129] sm:$0xff]  ;;  %v2904_v4 = vpack.i.bf16 %v384_v1, %v383_v0  ;;  %v397_v20 = vld [vmem:[#allocation2 + $0x32] sm:$0xff]  ;;  %v3841_v22 = vpack.i.bf16 %v396_v19, %v395_v18 }
  0x40   : > { %2880 = vrot.lane.b32.xlu0 %v3802_v49, %s3600_s6  ;;  %v2909_v5 = vpack.i.bf16 %v386_v3, %v385_v2  ;;  %v387_v6 = vld [vmem:[#allocation2 + $0x139] sm:$0xff]  ;;  %v388_v7 = vld [vmem:[#allocation2 + $0x141] sm:$0xff]  ;;  %v402_v27 = vld [vmem:[#allocation2 + $0x6a] sm:$0xff] }
  0x41   : > { %v389_v8 = vld [vmem:[#allocation2 + $0x151] sm:$0xff]  ;;  %v390_v9 = vld [vmem:[#allocation2 + $0x159] sm:$0xff]  ;;  %v2914_v10 = vpack.i.bf16 %v388_v7, %v387_v6  ;;  %v401_v26 = vld [vmem:[#allocation2 + $0x62] sm:$0xff] }
  0x42   : > { %v2919_v11 = vpack.i.bf16 %v390_v9, %v389_v8  ;;  %v391_v12 = vld [vmem:[#allocation2 + $0x169] sm:$0xff]  ;;  %v392_v13 = vld [vmem:[#allocation2 + $0x171] sm:$0xff]  ;;  %v398_v21 = vld [vmem:[#allocation2 + $0x3a] sm:$0xff]  ;;  %v3852_v30 = vpack.i.bf16 %v402_v27, %v401_v26 }
  0x43   : > { %2885 = vrot.lane.b32.xlu1 %v3818_v56, %s3600_s6  ;;  %v2924_v16 = vpack.i.bf16 %v392_v13, %v391_v12  ;;  %v3844_v23 = vpack.i.bf16 %v398_v21, %v397_v20  ;;  %v400_v25 = vld [vmem:[#allocation2 + $0x52] sm:$0xff]  ;;  %v403_v31 = vld [vmem:[#allocation2 + $0x7a] sm:$0xff]  ;;  %v404_v32 = vld [vmem:[#allocation2 + $0x82] sm:$0xff] }
  0x44   : > { %2890 = vrot.lane.b32.xlu0 %v3822_v57, %s3600_s6  ;;  %v3848_v28 = vpack.i.bf16 %v400_v25, %v399_v24  ;;  %v405_v34 = vld [vmem:[#allocation2 + $0x92] sm:$0xff]  ;;  %v406_v35 = vld [vmem:[#allocation2 + $0x9a] sm:$0xff]  ;;  %v3856_v36 = vpack.i.bf16 %v404_v32, %v403_v31  ;;  %v407_v40 = vld [vmem:[#allocation2 + $0xaa] sm:$0xff] }
  0x45   : > { %v3860_v38 = vpack.i.bf16 %v406_v35, %v405_v34  ;;  %v408_v41 = vld [vmem:[#allocation2 + $0xb2] sm:$0xff]  ;;  %v409_v42 = vld [vmem:[#allocation2 + $0xc2] sm:$0xff]  ;;  %v410_v43 = vld [vmem:[#allocation2 + $0xca] sm:$0xff] }
  0x46   : > { %v3864_v44 = vpack.i.bf16 %v408_v41, %v407_v40  ;;  %v3868_v46 = vpack.i.bf16 %v410_v43, %v409_v42  ;;  %v411_v47 = vld [vmem:[#allocation2 + $0xda] sm:$0xff]  ;;  %v412_v48 = vld [vmem:[#allocation2 + $0xe2] sm:$0xff]  ;;  %v413_v50 = vld [vmem:[#allocation2 + $0xf2] sm:$0xff] }
  0x47   : > { %2895 = vrot.lane.b32.xlu1 %v3826_v62, %s3600_s6  ;;  %v414_v51 = vld [vmem:[#allocation2 + $0xfa] sm:$0xff]  ;;  %v3872_v52 = vpack.i.bf16 %v412_v48, %v411_v47  ;;  %v415_v54 = vld [vmem:[#allocation2 + $0x10a] sm:$0xff]  ;;  %v416_v55 = vld [vmem:[#allocation2 + $0x112] sm:$0xff] }
  0x48   : > { %2900 = vrot.lane.b32.xlu0 %v3830_v63, %s3600_s6  ;;  %v3876_v53 = vpack.i.bf16 %v414_v51, %v413_v50  ;;  %v417_v58 = vld [vmem:[#allocation2 + $0x122] sm:$0xff]  ;;  %v418_v59 = vld [vmem:[#allocation2 + $0x12a] sm:$0xff]  ;;  %v3880_v60 = vpack.i.bf16 %v416_v55, %v415_v54  ;;  %v419_v0 = vld [vmem:[#allocation2 + $0x13a] sm:$0xff] }
  0x49   : > { %v2989_v61 = vpack.i.bf16 %v418_v59, %v417_v58  ;;  %v420_v1 = vld [vmem:[#allocation2 + $0x142] sm:$0xff]  ;;  %v421_v2 = vld [vmem:[#allocation2 + $0x152] sm:$0xff]  ;;  %v422_v3 = vld [vmem:[#allocation2 + $0x15a] sm:$0xff] }
  0x4a   : > { %v423_v6 = vld [vmem:[#allocation2 + $0x16a] sm:$0xff]  ;;  %v424_v7 = vld [vmem:[#allocation2 + $0x172] sm:$0xff]  ;;  %v3889_v9 = vld [vmem:[#allocation2 + $0x20] sm:$0xff] }
  0x4b   : > { %2905 = vrot.lane.b32.xlu1 %v2904_v4, %s3600_s6  ;;  %v2994_v4 = vpack.i.bf16 %v420_v1, %v419_v0  ;;  %v3887_v8 = vld [vmem:[#allocation2 + $0x18] sm:$0xff]  ;;  %v3895_v12 = vld [vmem:[#allocation2 + $0x30] sm:$0xff]  ;;  %v3899_v14 = vld [vmem:[#allocation2 + $0x48] sm:$0xff] }
  0x4c   : > { %2910 = vrot.lane.b32.xlu0 %v2909_v5, %s3600_s6  ;;  %v2999_v5 = vpack.i.bf16 %v422_v3, %v421_v2  ;;  %v3897_v13 = vld [vmem:[#allocation2 + $0x38] sm:$0xff]  ;;  %v3901_v15 = vld [vmem:[#allocation2 + $0x50] sm:$0xff]  ;;  %v3909_v18 = vld [vmem:[#allocation2 + $0x60] sm:$0xff] }
  0x4d   : > { %v3911_v19 = vld [vmem:[#allocation2 + $0x68] sm:$0xff]  ;;  %v3913_v20 = vld [vmem:[#allocation2 + $0x78] sm:$0xff]  ;;  %v3915_v21 = vld [vmem:[#allocation2 + $0x80] sm:$0xff] }
  0x4e   : > { %v3024_v24 = vpack.i.bf16 %v3911_v19, %v3909_v18  ;;  %v3029_v25 = vpack.i.bf16 %v3915_v21, %v3913_v20  ;;  %v3923_v26 = vld [vmem:[#allocation2 + $0x90] sm:$0xff]  ;;  %v3925_v27 = vld [vmem:[#allocation2 + $0x98] sm:$0xff]  ;;  %v437_v31 = vld [vmem:[#allocation2 + $0xa8] sm:$0xff] }
  0x4f   : > { %2915 = vrot.lane.b32.xlu1 %v2914_v10, %s3600_s6  ;;  %v3004_v10 = vpack.i.bf16 %v424_v7, %v423_v6  ;;  %4888 = vst [vmem:[#allocation9_spill] sm:$0xff] %v3923_v26  ;;  %v3927_v32 = vld [vmem:[#allocation2 + $0xb0] sm:$0xff]  ;;  %v3034_v34 = vpack.i.bf16 %v3925_v27, %v3923_v26  ;;  %v3489_v40 = vld [vmem:[%s4866_s1] sm:$0xff]   ;;  %v3490_v41 = vld [vmem:[%s4866_s1 + $0x8] sm:$0xff]  }
  0x50   : > { %2920 = vrot.lane.b32.xlu0 %v2919_v11, %s3600_s6  ;;  %v3009_v11 = vpack.i.bf16 %v3889_v9, %v3887_v8  ;;  %4889 = vst [vmem:[#allocation10_spill] sm:$0xff] %v3927_v32  ;;  %v3039_v35 = vpack.i.bf16 %v3927_v32, %v437_v31  ;;  %2750 = vmatprep.subr.bf16.mxu0 %v3489_v40  ;;  %v3491_v42 = vld [vmem:[%s4866_s1 + $0x10] ss:$0 sps:$4 sm:$0x33]   ;;  %v295_v43 = vld [vmem:[%s3733_s5 + $0xf8] sm:$0xff]  ;;  %v345_v50 = vld [vmem:[#allocation2 + $0xc0] sm:$0xff] }
  0x51   : > { %2788 = vmatprep.subr.bf16.mxu1 %v3489_v40  ;;  %2751 = vmatpush3.bf16.msra.mxu0 %v3489_v40  ;;  %328 = vst.msk [vmem:[#allocation2 + $0x189] sm:$0xff] %vm218_vm0, %v295_v43  ;;  %v346_v51 = vld [vmem:[#allocation2 + $0xc8] sm:$0xff]  ;;  %v4040_v0 = vld [vmem:[#allocation2 + $0xd8] sm:$0xff]  ;;  %v4042_v1 = vld [vmem:[#allocation2 + $0xe0] sm:$0xff] }
  0x52   : > { %2791 = vmatpush3.bf16.msra.mxu1 %v3489_v40  ;;  %2752 = vmatprep.subr.bf16.mxu0 %v3490_v41  ;;  %v3194_v55 = vpack.i.bf16 %v346_v51, %v345_v50  ;;  %4896 = vst [vmem:[#allocation17_spill] sm:$0xff] %v4040_v0  ;;  %4897 = vst [vmem:[#allocation18_spill] sm:$0xff] %v4042_v1  ;;  %v349_v7 = vld [vmem:[#allocation2 + $0xf0] sm:$0xff]  ;;  %v4097_v50 = vld [vmem:[#allocation2 + $0x158] sm:$0xff] }
  0x53   : > { %2925 = vrot.lane.b32.xlu1 %v2924_v16, %s3600_s6  ;;  %v3014_v16 = vpack.i.bf16 %v3897_v13, %v3895_v12  ;;  %2789 = vmatprep.subr.bf16.mxu1 %v3490_v41  ;;  %v570_v31 = vld [vmem:[#allocation2 + $0xf1] sm:$0xff] }
  0x54   : > { %2930 = vrot.lane.b32.xlu0 %v2929_v17, %s3601_s7  ;;  %v3019_v17 = vpack.i.bf16 %v3901_v15, %v3899_v14  ;;  %v352_v40 = vld [vmem:[#allocation2 + $0x110] sm:$0xff] }
  0x55   : > { %2753 = vmatpush3.bf16.msra.mxu0 %v3490_v41 }
  0x56   : > { %2792 = vmatpush3.bf16.msra.mxu1 %v3490_v41  ;;  %2794 = vmatprep.subr.msk.bf16.mxu0 %vm1990_vm3, %v3491_v42 }
  0x57   : > { %2935 = vrot.lane.b32.xlu1 %v3841_v22, %s3601_s7  ;;  %2795 = vmatprep.subr.msk.bf16.mxu1 %vm1990_vm3, %v3491_v42 }
  0x58   : > { %2940 = vrot.lane.b32.xlu0 %v3844_v23, %s3601_s7 }
  0x5b   : > { %2945 = vrot.lane.b32.xlu1 %v3848_v28, %s3601_s7 }
  0x5c   : > { %2950 = vrot.lane.b32.xlu0 %v3852_v30, %s3601_s7 }
  0x5f   : > { %2955 = vrot.lane.b32.xlu1 %v3856_v36, %s3601_s7 }
  0x60   : > { %2960 = vrot.lane.b32.xlu0 %v3860_v38, %s3601_s7 }
  0x63   : > { %2965 = vrot.lane.b32.xlu1 %v3864_v44, %s3601_s7 }
  0x64   : > { %2970 = vrot.lane.b32.xlu0 %v3868_v46, %s3601_s7 }
  0x67   : > { %2975 = vrot.lane.b32.xlu1 %v3872_v52, %s3601_s7 }
  0x68   : > { %2980 = vrot.lane.b32.xlu0 %v3876_v53, %s3601_s7 }
  0x6b   : > { %2985 = vrot.lane.b32.xlu1 %v3880_v60, %s3601_s7 }
  0x6c   : > { %2990 = vrot.lane.b32.xlu0 %v2989_v61, %s3601_s7 }
  0x6f   : > { %2995 = vrot.lane.b32.xlu1 %v2994_v4, %s3601_s7 }
  0x70   : > { %3000 = vrot.lane.b32.xlu0 %v2999_v5, %s3601_s7 }
  0x73   : > { %3005 = vrot.lane.b32.xlu1 %v3004_v10, %s3601_s7  ;;  %v350_v10 = vld [vmem:[#allocation2 + $0xf8] sm:$0xff]  ;;  %s4648_s7 = scalar_lea.vmem %s4867_s2, %s2698_s30  ;;  %s3608_s30 = smov [#allocation3]  }
  0x74   : > { %3010 = vrot.lane.b32.xlu0 %v3009_v11, %s3602_s8 }
  0x77   : > { %3015 = vrot.lane.b32.xlu1 %v3014_v16, %s3602_s8 }
  0x78   : > { %3020 = vrot.lane.b32.xlu0 %v3019_v17, %s3602_s8 }
  0x7b   : > { %3025 = vrot.lane.b32.xlu1 %v3024_v24, %s3602_s8 }
  0x7c   : > { %3030 = vrot.lane.b32.xlu0 %v3029_v25, %s3602_s8 }
  0x7f   : > { %3035 = vrot.lane.b32.xlu1 %v3034_v34, %s3602_s8 }
  0x80   : > { %3040 = vrot.lane.b32.xlu0 %v3039_v35, %s3602_s8 }
  0x83   : > { %3045 = vrot.lane.b32.xlu1 %v3782_v33, %s3603_s11  ;;  %v1992_v33 = vsel %vm1990_vm3, %v3491_v42, 0  ;;  %v572_v42 = vld [vmem:[#allocation2 + $0x109] sm:$0xff] }
  0x84   : > { %3050 = vrot.lane.b32.xlu0 %v3780_v29, %s3603_s11  ;;  %2755 = vmatpush3.bf16.msra.mxu0 %v1992_v33 }
  0x85   : > { %2793 = vmatpush3.bf16.msra.mxu1 %v1992_v33  ;;  %v573_v33 = vld [vmem:[#allocation2 + $0x111] sm:$0xff] }
  0x87   : > { %3055 = vrot.lane.b32.xlu1 %v3841_v22, %s3604_s14  ;;  %v294_v22 = vld [vmem:[%s3733_s5 + $0xf0] sm:$0xff]  ;;  %s3507_s5 = sshll.u32 %s3608_s30, 4  ;;  %s3508_s5 = int_to_ptr.vmem [resolvable:$false] %s3507_s5 }
  0x88   : > { %3060 = vrot.lane.b32.xlu0 %v3844_v23, %s3604_s14  ;;  %327 = vst.msk [vmem:[#allocation2 + $0x181] sm:$0xff] %vm218_vm0, %v294_v22  ;;  %s3509_s6 = scalar_lea.vmem %s3508_s5, 32  ;;  %p3510_p0 = scmp.lt.s32.totalorder %s4791_s10, %s3508_s5 }
  0x8b   : > { %3065 = vrot.lane.b32.xlu1 %v3014_v16, %s3605_s23 }
  0x8c   : > { %3070 = vrot.lane.b32.xlu0 %v3019_v17, %s3605_s23 }
  0x8f   : > { %3075 = vrot.lane.b32.xlu1 %v3780_v29, %s3606_s28 }
  0x90   : > { %3080 = vrot.lane.b32.xlu0 %v3788_v37, %s3606_s28 }
  0x93   : > { %3085 = vrot.lane.b32.xlu1 %v3844_v23, %s3607_s29 }
  0x94   : > { %3090 = vrot.lane.b32.xlu0 %v3848_v28, %s3607_s29 }
  0x95   : > { %v3981_v29 = vpop.permute.xlu0 %2850 }
  0x97   : > { %3095 = vrot.lane.b32.xlu1 %v3788_v37, %s3603_s11 }
  0x98   : > { %3100 = vrot.lane.b32.xlu0 %v3794_v39, %s3603_s11 }
  0x9b   : > { %3105 = vrot.lane.b32.xlu1 %v3848_v28, %s3604_s14 }
  0x9c   : > { %3110 = vrot.lane.b32.xlu0 %v3852_v30, %s3604_s14 }
  0x9f   : > { %3115 = vrot.lane.b32.xlu1 %v3024_v24, %s3605_s23 }
  0xa0   : > { %3120 = vrot.lane.b32.xlu0 %v3029_v25, %s3605_s23 }
  0xa3   : > { %3125 = vrot.lane.b32.xlu1 %v3794_v39, %s3606_s28 }
  0xa4   : > { %3130 = vrot.lane.b32.xlu0 %v3798_v45, %s3606_s28 }
  0xa7   : > { %3135 = vrot.lane.b32.xlu1 %v3852_v30, %s3607_s29 }
  0xa8   : > { %3140 = vrot.lane.b32.xlu0 %v3856_v36, %s3607_s29 }
  0xa9   : > { %v3987_v37 = vpop.permute.xlu1 %2860 }
  0xaa   : > { %v3989_v23 = vpop.permute.xlu0 %2855 }
  0xab   : > { %3145 = vrot.lane.b32.xlu1 %v3798_v45, %s3603_s11 }
  0xac   : > { %3150 = vrot.lane.b32.xlu0 %v3802_v49, %s3603_s11 }
  0xad   : > { %v3995_v39 = vpop.permute.xlu1 %2865 }
  0xae   : > { %v3997_v28 = vpop.permute.xlu0 %2870 }
  0xaf   : > { %3155 = vrot.lane.b32.xlu1 %v3856_v36, %s3604_s14 }
  0xb0   : > { %3160 = vrot.lane.b32.xlu0 %v3860_v38, %s3604_s14 }
  0xb1   : > { %v4003_v30 = vpop.permute.xlu1 %2875 }
  0xb2   : > { %v4005_v47 = vpop.permute.xlu0 %2880 }
  0xb3   : > { %3165 = vrot.lane.b32.xlu1 %v3034_v34, %s3605_s23  ;;  %v571_v34 = vld [vmem:[#allocation2 + $0xf9] sm:$0xff] }
  0xb4   : > { %3170 = vrot.lane.b32.xlu0 %v3039_v35, %s3605_s23  ;;  %v351_v35 = vld [vmem:[#allocation2 + $0x108] sm:$0xff] }
  0xb5   : > { %v4009_v45 = vpop.permute.xlu1 %2885 }
  0xb6   : > { %v4011_v48 = vpop.permute.xlu0 %2890 }
  0xb7   : > { %4890 = vst [vmem:[#allocation11_spill] sm:$0xff] %v4011_v48  ;;  %3175 = vrot.lane.b32.xlu1 %v3802_v49, %s3606_s28 }
  0xb8   : > { %3180 = vrot.lane.b32.xlu0 %v3818_v56, %s3606_s28 }
  0xb9   : > { %v4017_v36 = vpop.permute.xlu1 %2895 }
  0xba   : > { %4891 = vst [vmem:[#allocation12_spill] sm:$0xff] %v4017_v36  ;;  %v4019_v54 = vpop.permute.xlu0 %2900 }
  0xbb   : > { %4892 = vst [vmem:[#allocation13_spill] sm:$0xff] %v4019_v54  ;;  %3185 = vrot.lane.b32.xlu1 %v3860_v38, %s3607_s29  ;;  %v329_v54 = vld [vmem:[#allocation2] sm:$0xff] }
  0xbc   : > { %3190 = vrot.lane.b32.xlu0 %v3864_v44, %s3607_s29 }
  0xbd   : > { %v4025_v58 = vpop.permute.xlu1 %2905 }
  0xbe   : > { %4893 = vst [vmem:[#allocation14_spill] sm:$0xff] %v4025_v58  ;;  %v4027_v59 = vpop.permute.xlu0 %2910  ;;  %v330_v58 = vld [vmem:[#allocation2 + $0x8] sm:$0xff] }
  0xbf   : > { %4894 = vst [vmem:[#allocation15_spill] sm:$0xff] %v4027_v59  ;;  %3195 = vrot.lane.b32.xlu1 %v3194_v55, %s3602_s8  ;;  %v608_v59 = vld [vmem:[#allocation2 + $0x13a] sm:$0xff] }
  0xc0   : > { %3200 = vrot.lane.b32.xlu0 %v3818_v56, %s3603_s11  ;;  %v3224_v56 = vpack.i.bf16 %v4042_v1, %v4040_v0  ;;  %v2858_v0 = vunpack.i.h.bf16 %v3989_v23 }
  0xc1   : > { %v4032_v49 = vpop.permute.xlu1 %2915 }
  0xc2   : > { %4895 = vst [vmem:[#allocation16_spill] sm:$0xff] %v4032_v49  ;;  %v2921_v61 = vpop.permute.xlu0 %2920  ;;  %v577_v49 = vld [vmem:[#allocation2 + $0x141] sm:$0xff] }
  0xc3   : > { %3205 = vrot.lane.b32.xlu1 %v3822_v57, %s3603_s11  ;;  %v2923_v22 = vunpack.i.h.bf16 %v2921_v61  ;;  %v2922_v43 = vunpack.i.l.bf16 %v2921_v61 }
  0xc4   : > { %3210 = vrot.lane.b32.xlu0 %v3864_v44, %s3604_s14 }
  0xc5   : > { %v4038_v38 = vpop.permute.xlu1 %2925  ;;  %v1671_v61 = vsel %vm218_vm0, %v4097_v50, %v2923_v22 }
  0xc6   : > { %v4044_v2 = vpop.permute.xlu0 %2930 }
  0xc7   : > { %3215 = vrot.lane.b32.xlu1 %v3868_v46, %s3604_s14  ;;  %v2932_v1 = vunpack.i.l.bf16 %v4044_v2 }
  0xc8   : > { %3220 = vrot.lane.b32.xlu0 %v3194_v55, %s3605_s23 }
  0xc9   : > { %v4051_v3 = vpop.permute.xlu1 %2935 }
  0xca   : > { %v4053_v4 = vpop.permute.xlu0 %2940 }
  0xcb   : > { %3225 = vrot.lane.b32.xlu1 %v3224_v56, %s3605_s23 }
  0xcc   : > { %3230 = vrot.lane.b32.xlu0 %v3822_v57, %s3606_s28  ;;  %v3254_v57 = vpack.i.bf16 %v350_v10, %v349_v7  ;;  %v2928_v7 = vunpack.i.h.bf16 %v4038_v38  ;;  %v2927_v10 = vunpack.i.l.bf16 %v4038_v38 }
  0xcd   : > { %v4058_v44 = vpop.permute.xlu1 %2945 }
  0xce   : > { %v4060_v5 = vpop.permute.xlu0 %2950 }
  0xcf   : > { %3235 = vrot.lane.b32.xlu1 %v3826_v62, %s3606_s28 }
  0xd0   : > { %3240 = vrot.lane.b32.xlu0 %v3868_v46, %s3607_s29 }
  0xd1   : > { %v4066_v6 = vpop.permute.xlu1 %2955 }
  0xd2   : > { %v4068_v11 = vpop.permute.xlu0 %2960 }
  0xd3   : > { %3245 = vrot.lane.b32.xlu1 %v3872_v52, %s3607_s29 }
  0xd4   : > { %3250 = vrot.lane.b32.xlu0 %v3224_v56, %s3602_s8  ;;  %v3294_v56 = vpack.i.bf16 %v573_v33, %v572_v42 }
  0xd5   : > { %v4073_v16 = vpop.permute.xlu1 %2965 }
  0xd6   : > { %v4075_v17 = vpop.permute.xlu0 %2970 }
  0xd7   : > { %4898 = vst [vmem:[#allocation19_spill] sm:$0xff] %v4075_v17  ;;  %3255 = vrot.lane.b32.xlu1 %v3254_v57, %s3602_s8  ;;  %v2937_v17 = vunpack.i.l.bf16 %v4051_v3 }
  0xd8   : > { %3260 = vrot.lane.b32.xlu0 %v3826_v62, %s3603_s11  ;;  %v3284_v62 = vpack.i.bf16 %v352_v40, %v351_v35 }
  0xd9   : > { %v4080_v46 = vpop.permute.xlu1 %2975 }
  0xda   : > { %4899 = vst [vmem:[#allocation20_spill] sm:$0xff] %v4080_v46  ;;  %v4082_v24 = vpop.permute.xlu0 %2980 }
  0xdb   : > { %4900 = vst [vmem:[#allocation21_spill] sm:$0xff] %v4082_v24  ;;  %3265 = vrot.lane.b32.xlu1 %v3830_v63, %s3603_s11  ;;  %v3289_v63 = vpack.i.bf16 %v571_v34, %v570_v31  ;;  %v4108_v31 = vld [vmem:[#allocation2 + $0x168] sm:$0xff]  ;;  %v4110_v34 = vld [vmem:[#allocation2 + $0x170] sm:$0xff]  ;;  %v484_v24 = vld [vmem:[#allocation2 + $0x159] sm:$0xff] }
  0xdc   : > { %3270 = vrot.lane.b32.xlu0 %v3872_v52, %s3604_s14  ;;  %v4095_v52 = vld [vmem:[#allocation2 + $0x150] sm:$0xff] }
  0xdd   : > { %v4088_v25 = vpop.permute.xlu1 %2985 }
  0xde   : > { %4901 = vst [vmem:[#allocation22_spill] sm:$0xff] %v4088_v25  ;;  %v4090_v41 = vpop.permute.xlu0 %2990  ;;  %v609_v25 = vld [vmem:[#allocation2 + $0x142] sm:$0xff] }
  0xdf   : > { %4902 = vst [vmem:[#allocation23_spill] sm:$0xff] %v4090_v41  ;;  %3275 = vrot.lane.b32.xlu1 %v3876_v53, %s3604_s14  ;;  %v1672_v41 = vsel %vm218_vm0, %v4108_v31, %v2927_v10  ;;  %v479_v10 = vld [vmem:[#allocation2 + $0x121] sm:$0xff]  ;;  %v4175_v48 = vpack.i.bf16 %v609_v25, %v608_v59 }
  0xe0   : > { %3280 = vrot.lane.b32.xlu0 %v3254_v57, %s3605_s23  ;;  %v1670_v57 = vsel %vm218_vm0, %v4095_v52, %v2922_v43  ;;  %v1673_v43 = vsel %vm218_vm0, %v4110_v34, %v2928_v7 }
  0xe1   : > { %v4099_v51 = vpop.permute.xlu1 %2995 }
  0xe2   : > { %4903 = vst [vmem:[#allocation24_spill] sm:$0xff] %v4099_v51  ;;  %v3001_v55 = vpop.permute.xlu0 %3000 }
  0xe3   : > { %v3003_v35 = vunpack.i.h.bf16 %v3001_v55  ;;  %v3002_v40 = vunpack.i.l.bf16 %v3001_v55  ;;  %3285 = vrot.lane.b32.xlu1 %v3284_v62, %s3605_s23 }
  0xe4   : > { %3290 = vrot.lane.b32.xlu0 %v3289_v63, %s3606_s28 }
  0xe5   : > { %v4114_v42 = vsel %vm1674_vm4, %v1670_v57, %v3002_v40  ;;  %v4117_v38 = vsel %vm1674_vm4, %v1671_v61, %v3003_v35  ;;  %v3006_v33 = vpop.permute.xlu1 %3005  ;;  %v353_v61 = vld [vmem:[#allocation2 + $0x120] sm:$0xff]  ;;  %v354_v57 = vld [vmem:[#allocation2 + $0x128] sm:$0xff] }
  0xe6   : > { %4904 = vst [vmem:[#allocation25_spill] sm:$0xff] %v4114_v42  ;;  %4905 = vst [vmem:[#allocation26_spill] sm:$0xff] %v4117_v38  ;;  %v3008_v55 = vunpack.i.h.bf16 %v3006_v33  ;;  %v3007_v51 = vunpack.i.l.bf16 %v3006_v33  ;;  %v4119_v22 = vpop.permute.xlu0 %3010  ;;  %v3314_v7 = vpack.i.bf16 %v354_v57, %v353_v61  ;;  %v355_v57 = vld [vmem:[#allocation2 + $0x138] sm:$0xff]  ;;  %v356_v42 = vld [vmem:[#allocation2 + $0x140] sm:$0xff] }
  0xe7   : > { %3295 = vrot.lane.b32.xlu1 %v3294_v56, %s3606_s28  ;;  %v3013_v32 = vunpack.i.h.bf16 %v4119_v22 }
  0xe8   : > { %v4127_v63 = vsel %vm1674_vm4, %v1673_v43, %v3008_v55  ;;  %v4130_v40 = vsel %vm1674_vm4, %v1672_v41, %v3007_v51  ;;  %3300 = vrot.lane.b32.xlu0 %v3876_v53, %s3607_s29  ;;  %v480_v55 = vld [vmem:[#allocation2 + $0x129] sm:$0xff] }
  0xe9   : > { %4906 = vst [vmem:[#allocation27_spill] sm:$0xff] %v4127_v63  ;;  %4907 = vst [vmem:[#allocation28_spill] sm:$0xff] %v4130_v40  ;;  %v4134_v35 = vpop.permute.xlu1 %3015  ;;  %v3324_v53 = vpack.i.bf16 %v480_v55, %v479_v10  ;;  %v511_v51 = vld [vmem:[#allocation2 + $0x122] sm:$0xff]  ;;  %v512_v63 = vld [vmem:[#allocation2 + $0x12a] sm:$0xff]  ;;  %v4162_v55 = vpack.i.bf16 %v356_v42, %v355_v57  ;;  %v2857_v42 = vunpack.i.l.bf16 %v3989_v23  ;;  %v2933_v57 = vunpack.i.h.bf16 %v4044_v2 }
  0xea   : > { %v4136_v33 = vpop.permute.xlu0 %3020  ;;  %v3012_v23 = vunpack.i.l.bf16 %v4119_v22  ;;  %v4183_v2 = vpack.i.bf16 %v4097_v50, %v4095_v52  ;;  %v3018_v59 = vunpack.i.h.bf16 %v4134_v35  ;;  %v3017_v25 = vunpack.i.l.bf16 %v4134_v35 }
  0xeb   : > { %3305 = vrot.lane.b32.xlu1 %v3880_v60, %s3607_s29  ;;  %v1644_v22 = vsel %vm218_vm0, %v3887_v8, %v2857_v42  ;;  %v1645_v52 = vsel %vm218_vm0, %v3889_v9, %v2858_v0 }
  0xec   : > { %3310 = vrot.lane.b32.xlu0 %v3284_v62, %s3602_s8  ;;  %v4152_v62 = vpack.i.bf16 %v512_v63, %v511_v51  ;;  %v2853_v63 = vunpack.i.h.bf16 %v3981_v29  ;;  %v2852_v51 = vunpack.i.l.bf16 %v3981_v29  ;;  %v2938_v29 = vunpack.i.h.bf16 %v4051_v3 }
  0xed   : > { %v4141_v43 = vpop.permute.xlu1 %3025 }
  0xee   : > { %v4143_v41 = vpop.permute.xlu0 %3030  ;;  %v1643_v3 = vsel %vm218_vm0, %v330_v58, %v2853_v63 }
  0xef   : > { %3315 = vrot.lane.b32.xlu1 %v3314_v7, %s3602_s8 }
  0xf0   : > { %3320 = vrot.lane.b32.xlu0 %v3294_v56, %s3603_s11  ;;  %v576_v56 = vld [vmem:[#allocation2 + $0x139] sm:$0xff] }
  0xf1   : > { %v4147_v40 = vpop.permute.xlu1 %3035 }
  0xf2   : > { %v4149_v38 = vpop.permute.xlu0 %3040 }
  0xf3   : > { %3325 = vrot.lane.b32.xlu1 %v3324_v53, %s3603_s11 }
  0xf4   : > { %3330 = vrot.lane.b32.xlu0 %v3880_v60, %s3604_s14  ;;  %v483_v60 = vld [vmem:[#allocation2 + $0x151] sm:$0xff] }
  0xf5   : > { %v4156_v61 = vpop.permute.xlu1 %3045  ;;  %v4185_v26 = vpack.i.bf16 %v484_v24, %v483_v60  ;;  %v1676_v24 = vsel %vm1674_vm4, %v1643_v3, %v2933_v57 }
  0xf6   : > { %v4158_v10 = vpop.permute.xlu0 %3050  ;;  %v3048_v35 = vunpack.i.h.bf16 %v4156_v61 }
  0xf7   : > { %3335 = vrot.lane.b32.xlu1 %v4152_v62, %s3604_s14  ;;  %v3053_v9 = vunpack.i.h.bf16 %v4158_v10  ;;  %v3052_v0 = vunpack.i.l.bf16 %v4158_v10 }
  0xf8   : > { %3340 = vrot.lane.b32.xlu0 %v3314_v7, %s3605_s23  ;;  %v4173_v7 = vpack.i.bf16 %v577_v49, %v576_v56  ;;  %v1642_v49 = vsel %vm218_vm0, %v329_v54, %v2852_v51  ;;  %v1677_v54 = vsel %vm1674_vm4, %v1644_v22, %v2937_v17  ;;  %v1678_v56 = vsel %vm1674_vm4, %v1645_v52, %v2938_v29 }
  0xf9   : > { %v3056_v46 = vpop.permute.xlu1 %3055  ;;  %v1675_v50 = vsel %vm1674_vm4, %v1642_v49, %v2932_v1  ;;  %v1709_v51 = vsel %vm1707_vm5, %v1676_v24, %v3013_v32  ;;  %v1710_v1 = vsel %vm1707_vm5, %v1677_v54, %v3017_v25  ;;  %v1711_v17 = vsel %vm1707_vm5, %v1678_v56, %v3018_v59 }
  0xfa   : > { %v3061_v36 = vpop.permute.xlu0 %3060  ;;  %v1708_v8 = vsel %vm1707_vm5, %v1675_v50, %v3012_v23  ;;  %v3058_v60 = vunpack.i.h.bf16 %v3056_v46  ;;  %v3057_v42 = vunpack.i.l.bf16 %v3056_v46  ;;  %v1742_v3 = vsel %vm1740_vm6, %v1709_v51, %v3048_v35 }
  0xfb   : > { %3345 = vrot.lane.b32.xlu1 %v4162_v55, %s3605_s23  ;;  %v3062_v57 = vunpack.i.l.bf16 %v3061_v36  ;;  %v1743_v59 = vsel %vm1740_vm6, %v1710_v1, %v3052_v0  ;;  %v1744_v46 = vsel %vm1740_vm6, %v1711_v17, %v3053_v9 }
  0xfc   : > { %3350 = vrot.lane.b32.xlu0 %v3324_v53, %s3606_s28  ;;  %v3047_v53 = vunpack.i.l.bf16 %v4156_v61  ;;  %v3063_v61 = vunpack.i.h.bf16 %v3061_v36 }
  0xfd   : > { %v3066_v58 = vpop.permute.xlu1 %3065  ;;  %v1776_v54 = vsel %vm1773_vm7, %v1743_v59, %v3062_v57 }
  0xfe   : > { %v3071_v63 = vpop.permute.xlu0 %3070  ;;  %v3068_v32 = vunpack.i.h.bf16 %v3066_v58  ;;  %v3067_v29 = vunpack.i.l.bf16 %v3066_v58  ;;  %v1741_v10 = vsel %vm1740_vm6, %v1708_v8, %v3047_v53  ;;  %v1777_v56 = vsel %vm1773_vm7, %v1744_v46, %v3063_v61 }
  0xff   : > { %3355 = vrot.lane.b32.xlu1 %v4173_v7, %s3606_s28  ;;  %v3073_v49 = vunpack.i.h.bf16 %v3071_v63  ;;  %v3072_v22 = vunpack.i.l.bf16 %v3071_v63  ;;  %v1774_v36 = vsel %vm1773_vm7, %v1741_v10, %v3057_v42  ;;  %v516_v10 = vld [vmem:[#allocation2 + $0x15a] sm:$0xff] }
 0x100   : > { %3360 = vrot.lane.b32.xlu0 %v4152_v62, %s3607_s29  ;;  %v1775_v62 = vsel %vm1773_vm7, %v1742_v3, %v3058_v60  ;;  %v1807_v35 = vsel %vm1806_vm8, %v1774_v36, %v3067_v29  ;;  %v612_v36 = vld [vmem:[#allocation2 + $0x16a] sm:$0xff] }
 0x101   : > { %v3076_v23 = vpop.permute.xlu1 %3075  ;;  %v1808_v53 = vsel %vm1806_vm8, %v1775_v62, %v3068_v32  ;;  %v1809_v8 = vsel %vm1806_vm8, %v1776_v54, %v3072_v22  ;;  %v1810_v51 = vsel %vm1806_vm8, %v1777_v56, %v3073_v49  ;;  %v2863_v62 = vunpack.i.h.bf16 %v3987_v37  ;;  %v455_v54 = vld [vmem:[#allocation2 + $0x180] sm:$0xff]  ;;  %v456_v56 = vld [vmem:[#allocation2 + $0x188] sm:$0xff] }
 0x102   : > { %v3081_v25 = vpop.permute.xlu0 %3080  ;;  %v3078_v52 = vunpack.i.h.bf16 %v3076_v23  ;;  %v3077_v24 = vunpack.i.l.bf16 %v3076_v23  ;;  %v515_v23 = vld [vmem:[#allocation2 + $0x152] sm:$0xff] }
 0x103   : > { %3365 = vrot.lane.b32.xlu1 %v4175_v48, %s3607_s29  ;;  %v3083_v50 = vunpack.i.h.bf16 %v3081_v25  ;;  %v3082_v58 = vunpack.i.l.bf16 %v3081_v25 }
 0x104   : > { %3370 = vrot.lane.b32.xlu0 %v4162_v55, %s3602_s8  ;;  %v1840_v55 = vsel %vm1839_vm9, %v1807_v35, %v3077_v24  ;;  %v1841_v42 = vsel %vm1839_vm9, %v1808_v53, %v3078_v52  ;;  %v580_v52 = vld [vmem:[#allocation2 + $0x169] sm:$0xff]  ;;  %v581_v24 = vld [vmem:[#allocation2 + $0x171] sm:$0xff]  ;;  %v2868_v35 = vunpack.i.h.bf16 %v3995_v39  ;;  %v2867_v53 = vunpack.i.l.bf16 %v3995_v39 }
 0x105   : > { %v3086_v63 = vpop.permute.xlu1 %3085  ;;  %v1842_v61 = vsel %vm1839_vm9, %v1809_v8, %v3082_v58  ;;  %v1843_v57 = vsel %vm1839_vm9, %v1810_v51, %v3083_v50  ;;  %v2862_v50 = vunpack.i.l.bf16 %v3987_v37  ;;  %v613_v58 = vld [vmem:[#allocation2 + $0x172] sm:$0xff]  ;;  %v2942_v8 = vunpack.i.l.bf16 %v4053_v4 }
 0x106   : > { %v3088_v9 = vunpack.i.h.bf16 %v3086_v63  ;;  %v3087_v0 = vunpack.i.l.bf16 %v3086_v63  ;;  %v3091_v1 = vpop.permute.xlu0 %3090  ;;  %v2943_v63 = vunpack.i.h.bf16 %v4053_v4  ;;  %v2947_v37 = vunpack.i.l.bf16 %v4058_v44 }
 0x107   : > { %v3093_v17 = vunpack.i.h.bf16 %v3091_v1  ;;  %v3092_v60 = vunpack.i.l.bf16 %v3091_v1  ;;  %3375 = vrot.lane.b32.xlu1 %v4183_v2, %s3602_s8  ;;  %v4264_v1 = vpack.i.bf16 %v581_v24, %v580_v52  ;;  %v3022_v39 = vunpack.i.l.bf16 %v4136_v33 }
 0x108   : > { %3380 = vrot.lane.b32.xlu0 %v4173_v7, %s3603_s11  ;;  %v1873_v32 = vsel %vm1872_vm10, %v1840_v55, %v3087_v0  ;;  %v1874_v29 = vsel %vm1872_vm10, %v1841_v42, %v3088_v9  ;;  %v4247_v7 = vpack.i.bf16 %v516_v10, %v515_v23  ;;  %v2948_v9 = vunpack.i.h.bf16 %v4058_v44 }
 0x109   : > { %v1875_v3 = vsel %vm1872_vm10, %v1842_v61, %v3092_v60  ;;  %v1876_v49 = vsel %vm1872_vm10, %v1843_v57, %v3093_v17  ;;  %v4240_v22 = vpop.permute.xlu1 %3095  ;;  %v1905_v25 = vpack.c.bf16 %v1874_v29, %v1873_v32  ;;  %v3023_v17 = vunpack.i.h.bf16 %v4136_v33 }
 0x10a   : > { %v1906_v59 = vpack.c.bf16 %v1876_v49, %v1875_v3  ;;  %v4242_v46 = vpop.permute.xlu0 %3100  ;;  %v4270_v4 = vpack.i.bf16 %v613_v58, %v612_v36  ;;  %v4272_v60 = vpack.i.bf16 %v456_v56, %v455_v54  ;;  %v1646_v44 = vsel %vm218_vm0, %v3895_v12, %v2862_v50 }
 0x10b   : > { %3385 = vrot.lane.b32.xlu1 %v4185_v26, %s3603_s11  ;;  %2756 = vmatprep.mubr.msk.bf16.mxu0 %vm1941_vm11, %v1905_v25  ;;  %v3027_v55 = vunpack.i.l.bf16 %v4141_v43  ;;  %v1649_v33 = vsel %vm218_vm0, %v3901_v15, %v2868_v35  ;;  %v1648_v42 = vsel %vm218_vm0, %v3899_v14, %v2867_v53  ;;  %v1679_v12 = vsel %vm1674_vm4, %v1646_v44, %v2942_v8 }
 0x10c   : > { %3390 = vrot.lane.b32.xlu0 %v4175_v48, %s3604_s14  ;;  %2757 = vmatmul.mubr.msk.bf16.vlgmr.msra.gmra.mrb[0].mxu0 %vm1941_vm11, %v1906_v59  ;;  %v4262_v48 = vpack.i.bf16 %v4110_v34, %v4108_v31  ;;  %v1647_v31 = vsel %vm218_vm0, %v3897_v13, %v2863_v62  ;;  %v3028_v34 = vunpack.i.h.bf16 %v4141_v43  ;;  %v1682_v13 = vsel %vm1674_vm4, %v1649_v33, %v2948_v9 }
 0x10d   : > { %v3106_v51 = vpop.permute.xlu1 %3105  ;;  %v1680_v61 = vsel %vm1674_vm4, %v1647_v31, %v2943_v63  ;;  %v1681_v32 = vsel %vm1674_vm4, %v1648_v42, %v2947_v37  ;;  %v3098_v43 = vunpack.i.h.bf16 %v4240_v22  ;;  %v3097_v29 = vunpack.i.l.bf16 %v4240_v22 }
 0x10e   : > { %v3111_v0 = vpop.permute.xlu0 %3110  ;;  %v1712_v23 = vsel %vm1707_vm5, %v1679_v12, %v3022_v39  ;;  %v1713_v15 = vsel %vm1707_vm5, %v1680_v61, %v3023_v17  ;;  %v3103_v14 = vunpack.i.h.bf16 %v4242_v46  ;;  %v3102_v10 = vunpack.i.l.bf16 %v4242_v46 }
 0x10f   : > { %3395 = vrot.lane.b32.xlu1 %v4247_v7, %s3604_s14  ;;  %v1714_v3 = vsel %vm1707_vm5, %v1681_v32, %v3027_v55  ;;  %v1715_v49 = vsel %vm1707_vm5, %v1682_v13, %v3028_v34  ;;  %v3108_v25 = vunpack.i.h.bf16 %v3106_v51  ;;  %v3107_v59 = vunpack.i.l.bf16 %v3106_v51 }
 0x110   : > { %3400 = vrot.lane.b32.xlu0 %v4183_v2, %s3605_s23  ;;  %v3113_v22 = vunpack.i.h.bf16 %v3111_v0  ;;  %v3112_v52 = vunpack.i.l.bf16 %v3111_v0  ;;  %v1745_v50 = vsel %vm1740_vm6, %v1712_v23, %v3097_v29  ;;  %v1746_v46 = vsel %vm1740_vm6, %v1713_v15, %v3098_v43  ;;  %v487_v23 = vld [vmem:[#allocation2 + $0x181] sm:$0xff]  ;;  %v488_v15 = vld [vmem:[#allocation2 + $0x189] sm:$0xff] }
 0x111   : > { %v3116_v57 = vpop.permute.xlu1 %3115  ;;  %v1748_v35 = vsel %vm1740_vm6, %v1715_v49, %v3103_v14  ;;  %v1747_v53 = vsel %vm1740_vm6, %v1714_v3, %v3102_v10  ;;  %v1779_v51 = vsel %vm1773_vm7, %v1746_v46, %v3108_v25  ;;  %v4346_v46 = vld [vmem:[#allocation2 + $0x199] sm:$0xff] }
 0x112   : > { %v3121_v2 = vpop.permute.xlu0 %3120  ;;  %v3118_v24 = vunpack.i.h.bf16 %v3116_v57  ;;  %v3117_v36 = vunpack.i.l.bf16 %v3116_v57  ;;  %v1780_v0 = vsel %vm1773_vm7, %v1747_v53, %v3112_v52  ;;  %v1781_v17 = vsel %vm1773_vm7, %v1748_v35, %v3113_v22  ;;  %v519_v22 = vld [vmem:[#allocation2 + $0x182] sm:$0xff] }
 0x113   : > { %3405 = vrot.lane.b32.xlu1 %v4262_v48, %s3605_s23  ;;  %v3123_v58 = vunpack.i.h.bf16 %v3121_v2  ;;  %v3122_v54 = vunpack.i.l.bf16 %v3121_v2  ;;  %v2873_v52 = vunpack.i.h.bf16 %v3997_v28  ;;  %v2953_v35 = vunpack.i.h.bf16 %v4060_v5 }
 0x114   : > { %3410 = vrot.lane.b32.xlu0 %v4185_v26, %s3606_s28  ;;  %v1778_v26 = vsel %vm1773_vm7, %v1745_v50, %v3107_v59  ;;  %v1812_v44 = vsel %vm1806_vm8, %v1779_v51, %v3118_v24  ;;  %v520_v24 = vld [vmem:[#allocation2 + $0x18a] sm:$0xff]  ;;  %v2872_v50 = vunpack.i.l.bf16 %v3997_v28  ;;  %v2952_v53 = vunpack.i.l.bf16 %v4060_v5  ;;  %v4356_v28 = vld [vmem:[#allocation2 + $0x1a2] sm:$0xff] }
 0x115   : > { %v3126_v62 = vpop.permute.xlu1 %3125  ;;  %v1811_v39 = vsel %vm1806_vm8, %v1778_v26, %v3117_v36  ;;  %v1813_v34 = vsel %vm1806_vm8, %v1780_v0, %v3122_v54  ;;  %v1814_v55 = vsel %vm1806_vm8, %v1781_v17, %v3123_v58  ;;  %v4340_v36 = vld [vmem:[#allocation2 + $0x198] sm:$0xff]  ;;  %v4348_v58 = vld [vmem:[#allocation2 + $0x1a1] sm:$0xff]  ;;  %v2878_v54 = vunpack.i.h.bf16 %v4003_v30 }
 0x116   : > { %v3131_v56 = vpop.permute.xlu0 %3130  ;;  %v3128_v63 = vunpack.i.h.bf16 %v3126_v62  ;;  %v3127_v8 = vunpack.i.l.bf16 %v3126_v62  ;;  %v553_v62 = vld [vmem:[#allocation2 + $0x1a0] sm:$0xff]  ;;  %v2957_v26 = vunpack.i.l.bf16 %v4066_v6  ;;  %v3033_v0 = vunpack.i.h.bf16 %v4143_v41 }
 0x117   : > { %3415 = vrot.lane.b32.xlu1 %v4264_v1, %s3606_s28  ;;  %v3133_v9 = vunpack.i.h.bf16 %v3131_v56  ;;  %v3132_v37 = vunpack.i.l.bf16 %v3131_v56  ;;  %v2877_v56 = vunpack.i.l.bf16 %v4003_v30  ;;  %v1651_v30 = vsel %vm218_vm0, %v3911_v19, %v2873_v52 }
 0x118   : > { %3420 = vrot.lane.b32.xlu0 %v4247_v7, %s3607_s29  ;;  %v1844_v12 = vsel %vm1839_vm9, %v1811_v39, %v3127_v8  ;;  %v1845_v7 = vsel %vm1839_vm9, %v1812_v44, %v3128_v63  ;;  %v4354_v8 = vld [vmem:[#allocation2 + $0x19a] sm:$0xff]  ;;  %v3032_v5 = vunpack.i.l.bf16 %v4143_v41  ;;  %v3474_v17 = vpack.i.bf16 %v4348_v58, %v4346_v46 }
 0x119   : > { %v3136_v31 = vpop.permute.xlu1 %3135  ;;  %v1846_v32 = vsel %vm1839_vm9, %v1813_v34, %v3132_v37  ;;  %v1847_v43 = vsel %vm1839_vm9, %v1814_v55, %v3133_v9  ;;  %v4360_v9 = vpack.i.bf16 %v520_v24, %v519_v22  ;;  %v3464_v37 = vpack.i.bf16 %v553_v62, %v4340_v36 }
 0x11a   : > { %v3138_v33 = vunpack.i.h.bf16 %v3136_v31  ;;  %v3137_v42 = vunpack.i.l.bf16 %v3136_v31  ;;  %v3141_v61 = vpop.permute.xlu0 %3140  ;;  %v3038_v39 = vunpack.i.h.bf16 %v4147_v40  ;;  %v3037_v44 = vunpack.i.l.bf16 %v4147_v40 }
 0x11b   : > { %v3143_v57 = vunpack.i.h.bf16 %v3141_v61  ;;  %v3142_v13 = vunpack.i.l.bf16 %v3141_v61  ;;  %3425 = vrot.lane.b32.xlu1 %v4270_v4, %s3607_s29  ;;  %v3484_v19 = vpack.i.bf16 %v4356_v28, %v4354_v8  ;;  %v1653_v41 = vsel %vm218_vm0, %v3915_v21, %v2878_v54 }
 0x11c   : > { %v1877_v29 = vsel %vm1872_vm10, %v1844_v12, %v3137_v42  ;;  %v1878_v2 = vsel %vm1872_vm10, %v1845_v7, %v3138_v33  ;;  %3430 = vrot.lane.b32.xlu0 %v4262_v48, %s3602_s8  ;;  %v4338_v48 = vpack.i.bf16 %v488_v15, %v487_v23  ;;  %v1652_v31 = vsel %vm218_vm0, %v3913_v20, %v2877_v56 }
 0x11d   : > { %v1907_v14 = vpack.c.bf16 %v1878_v2, %v1877_v29  ;;  %v1879_v10 = vsel %vm1872_vm10, %v1846_v32, %v3142_v13  ;;  %v1880_v3 = vsel %vm1872_vm10, %v1847_v43, %v3143_v57  ;;  %v4330_v49 = vpop.permute.xlu1 %3145  ;;  %v1685_v40 = vsel %vm1674_vm4, %v1652_v31, %v2957_v26 }
 0x11e   : > { %v1908_v25 = vpack.c.bf16 %v1880_v3, %v1879_v10  ;;  %v4332_v59 = vpop.permute.xlu0 %3150  ;;  %v3147_v42 = vunpack.i.l.bf16 %v4330_v49  ;;  %v1718_v57 = vsel %vm1707_vm5, %v1685_v40, %v3037_v44  ;;  %v2968_v8 = vunpack.i.h.bf16 %v4073_v16 }
 0x11f   : > { %3435 = vrot.lane.b32.xlu1 %v4272_v60, %s3602_s8  ;;  %2760 = vmatprep.mubr.msk.bf16.mxu0 %vm1941_vm11, %v1907_v14  ;;  %v3153_v20 = vunpack.i.h.bf16 %v4332_v59  ;;  %v3152_v7 = vunpack.i.l.bf16 %v4332_v59  ;;  %v2967_v28 = vunpack.i.l.bf16 %v4073_v16  ;;  %v3492_v16 = vld [vmem:[#allocation2 + $0xa8] sm:$0xff]  ;;  %s2693_s8 = sshll.u32 %s3656_s19, 4 }
 0x120   : > { %3440 = vrot.lane.b32.xlu0 %v4264_v1, %s3603_s11  ;;  %2761 = vmatmul.mubr.msk.bf16.gmra.mrb[4].mxu0 %vm1941_vm11, %v1908_v25  ;;  %v2958_v1 = vunpack.i.h.bf16 %v4066_v6  ;;  %v1650_v6 = vsel %vm218_vm0, %v3909_v18, %v2872_v50  ;;  %v1684_v18 = vsel %vm1674_vm4, %v1651_v30, %v2953_v35  ;;  %s4789_s20 = scalar_lea.hbm %s4868_s3, %s2693_s8 }
 0x121   : > { %v3156_v63 = vpop.permute.xlu1 %3155  ;;  %v1683_v34 = vsel %vm1674_vm4, %v1650_v6, %v2952_v53  ;;  %v1717_v21 = vsel %vm1707_vm5, %v1684_v18, %v3033_v0  ;;  %v1751_v52 = vsel %vm1740_vm6, %v1718_v57, %v3152_v7 }
 0x122   : > { %v3161_v51 = vpop.permute.xlu0 %3160  ;;  %v1686_v33 = vsel %vm1674_vm4, %v1653_v41, %v2958_v1  ;;  %v1716_v12 = vsel %vm1707_vm5, %v1683_v34, %v3032_v5  ;;  %v3158_v32 = vunpack.i.h.bf16 %v3156_v63  ;;  %v3157_v43 = vunpack.i.l.bf16 %v3156_v63 }
 0x123   : > { %3445 = vrot.lane.b32.xlu1 %v4338_v48, %s3603_s11  ;;  %v1719_v13 = vsel %vm1707_vm5, %v1686_v33, %v3038_v39  ;;  %v3163_v29 = vunpack.i.h.bf16 %v3161_v51  ;;  %v3162_v2 = vunpack.i.l.bf16 %v3161_v51  ;;  %v1749_v10 = vsel %vm1740_vm6, %v1716_v12, %v3147_v42  ;;  %s206_s11 = scalar_lea.vmem [#allocation5], %s4779_s27 }
 0x124   : > { %3450 = vrot.lane.b32.xlu0 %v4270_v4, %s3604_s14  ;;  %v3148_v4 = vunpack.i.h.bf16 %v4330_v49  ;;  %v1752_v22 = vsel %vm1740_vm6, %v1719_v13, %v3153_v20  ;;  %v2888_v42 = vunpack.i.h.bf16 %v4009_v45  ;;  %v2887_v12 = vunpack.i.l.bf16 %v4009_v45  ;;  %s2526_s12 = sshll.u32 %s206_s11, 4  ;;  %s4799_s12 = int_to_ptr.vmem [resolvable:$true] %s2526_s12 }
 0x125   : > { %v3166_v55 = vpop.permute.xlu1 %3165  ;;  %v1784_v58 = vsel %vm1773_vm7, %v1751_v52, %v3162_v2  ;;  %v1785_v54 = vsel %vm1773_vm7, %v1752_v22, %v3163_v29  ;;  %v2962_v20 = vunpack.i.l.bf16 %v4068_v11 }
 0x126   : > { %v3171_v61 = vpop.permute.xlu0 %3170  ;;  %v3168_v23 = vunpack.i.h.bf16 %v3166_v55  ;;  %v3167_v15 = vunpack.i.l.bf16 %v3166_v55  ;;  %v1750_v3 = vsel %vm1740_vm6, %v1717_v21, %v3148_v4  ;;  %v2882_v4 = vunpack.i.l.bf16 %v4005_v47 }
 0x127   : > { %3455 = vrot.lane.b32.xlu1 %v4360_v9, %s3604_s14  ;;  %v3173_v49 = vunpack.i.h.bf16 %v3171_v61  ;;  %v3172_v25 = vunpack.i.l.bf16 %v3171_v61  ;;  %v1783_v62 = vsel %vm1773_vm7, %v1750_v3, %v3158_v32  ;;  %v2963_v21 = vunpack.i.h.bf16 %v4068_v11  ;;  %v4909_v32 = vld [vmem:[#allocation10_spill] sm:$0xff] }
 0x128   : > { %3460 = vrot.lane.b32.xlu0 %v4272_v60, %s3605_s23  ;;  %v1782_v60 = vsel %vm1773_vm7, %v1749_v10, %v3157_v43  ;;  %v1816_v35 = vsel %vm1806_vm8, %v1783_v62, %v3168_v23  ;;  %v1657_v45 = vsel %vm218_vm0, %v4909_v32, %v2888_v42  ;;  %v3043_v43 = vunpack.i.h.bf16 %v4149_v38 }
 0x129   : > { %v3176_v14 = vpop.permute.xlu1 %3175  ;;  %v1815_v56 = vsel %vm1806_vm8, %v1782_v60, %v3167_v15  ;;  %v1817_v63 = vsel %vm1806_vm8, %v1784_v58, %v3172_v25  ;;  %v1818_v1 = vsel %vm1806_vm8, %v1785_v54, %v3173_v49  ;;  %v1690_v3 = vsel %vm1674_vm4, %v1657_v45, %v2968_v8 }
 0x12a   : > { %v3181_v59 = vpop.permute.xlu0 %3180  ;;  %v3178_v24 = vunpack.i.h.bf16 %v3176_v14  ;;  %v3177_v36 = vunpack.i.l.bf16 %v3176_v14  ;;  %v1656_v14 = vsel %vm218_vm0, %v3492_v16, %v2887_v12 }
 0x12b   : > { %3465 = vrot.lane.b32.xlu1 %v3464_v37, %s3605_s23  ;;  %v3183_v50 = vunpack.i.h.bf16 %v3181_v59  ;;  %v3182_v46 = vunpack.i.l.bf16 %v3181_v59  ;;  %v1689_v49 = vsel %vm1674_vm4, %v1656_v14, %v2967_v28  ;;  %s4797_s23 = scalar_lea.hbm %s4869_s4, %s2693_s8 }
 0x12c   : > { %3470 = vrot.lane.b32.xlu0 %v4338_v48, %s3606_s28  ;;  %v1848_v30 = vsel %vm1839_vm9, %v1815_v56, %v3177_v36  ;;  %v1849_v48 = vsel %vm1839_vm9, %v1816_v35, %v3178_v24 }
 0x12d   : > { %v3186_v53 = vpop.permute.xlu1 %3185  ;;  %v1850_v6 = vsel %vm1839_vm9, %v1817_v63, %v3182_v46  ;;  %v1851_v39 = vsel %vm1839_vm9, %v1818_v1, %v3183_v50 }
 0x12e   : > { %v3188_v26 = vunpack.i.h.bf16 %v3186_v53  ;;  %v3187_v51 = vunpack.i.l.bf16 %v3186_v53  ;;  %v3191_v37 = vpop.permute.xlu0 %3190 }
 0x12f   : > { %v3193_v0 = vunpack.i.h.bf16 %v3191_v37  ;;  %v3192_v5 = vunpack.i.l.bf16 %v3191_v37  ;;  %3475 = vrot.lane.b32.xlu1 %v3474_v17, %s3606_s28  ;;  %s2494_s28 = scalar_lea.sflag [#allocation4], %s4779_s27 }
 0x130   : > { %v1881_v44 = vsel %vm1872_vm10, %v1848_v30, %v3187_v51  ;;  %v1882_v41 = vsel %vm1872_vm10, %v1849_v48, %v3188_v26  ;;  %3480 = vrot.lane.b32.xlu0 %v4360_v9, %s3607_s29  ;;  %v2883_v9 = vunpack.i.h.bf16 %v4005_v47  ;;  %v4908_v47 = vld [vmem:[#allocation9_spill] sm:$0xff] }
 0x131   : > { %v1909_v31 = vpack.c.bf16 %v1882_v41, %v1881_v44  ;;  %v1883_v34 = vsel %vm1872_vm10, %v1850_v6, %v3192_v5  ;;  %v1884_v18 = vsel %vm1872_vm10, %v1851_v39, %v3193_v0  ;;  %v3196_v55 = vpop.permute.xlu1 %3195  ;;  %v1654_v13 = vsel %vm218_vm0, %v4908_v47, %v2882_v4 }
 0x132   : > { %v1910_v33 = vpack.c.bf16 %v1884_v18, %v1883_v34  ;;  %v3201_v40 = vpop.permute.xlu0 %3200  ;;  %v1655_v57 = vsel %vm218_vm0, %v3925_v27, %v2883_v9  ;;  %v3198_v11 = vunpack.i.h.bf16 %v3196_v55  ;;  %v3197_v2 = vunpack.i.l.bf16 %v3196_v55 }
 0x133   : > { %3485 = vrot.lane.b32.xlu1 %v3484_v19, %s3607_s29  ;;  %2764 = vmatprep.mubr.msk.bf16.mxu0 %vm1941_vm11, %v1909_v31  ;;  %v3042_v19 = vunpack.i.l.bf16 %v4149_v38  ;;  %v3203_v23 = vunpack.i.h.bf16 %v3201_v40  ;;  %v3202_v15 = vunpack.i.l.bf16 %v3201_v40  ;;  %v1687_v10 = vsel %vm1674_vm4, %v1654_v13, %v2962_v20  ;;  %s3503_s29 = scalar_lea.vmem %s4791_s10, 16 }
 0x134   : > { %2765 = vmatmul.mubr.msk.bf16.gmra.mrb[8].mxu0 %vm1941_vm11, %v1910_v33  ;;  %v1688_v27 = vsel %vm1674_vm4, %v1655_v57, %v2963_v21  ;;  %v1722_v50 = vsel %vm1707_vm5, %v1689_v49, %v3197_v2  ;;  %v1723_v46 = vsel %vm1707_vm5, %v1690_v3, %v3198_v11  ;;  %v4913_v49 = vld [vmem:[#allocation20_spill] sm:$0xff]  ;;  %p3504_p11 = scmp.ne.s32.totalorder %s4791_s10, %s3503_s29  ;;  %p3511_p1 = scmp.lt.s32.totalorder %s3509_s6, %s3503_s29 }
 0x135   : > { %v3206_v17 = vpop.permute.xlu1 %3205  ;;  %v1720_v25 = vsel %vm1707_vm5, %v1687_v10, %v3042_v19  ;;  %v1721_v52 = vsel %vm1707_vm5, %v1688_v27, %v3043_v43  ;;  %v4912_v10 = vld [vmem:[#allocation19_spill] sm:$0xff] }
 0x136   : > { %v3211_v61 = vpop.permute.xlu0 %3210  ;;  %v3207_v24 = vunpack.i.l.bf16 %v3206_v17  ;;  %v1753_v58 = vsel %vm1740_vm6, %v1720_v25, %v3202_v15  ;;  %v1754_v54 = vsel %vm1740_vm6, %v1721_v52, %v3203_v23  ;;  %v3208_v56 = vunpack.i.h.bf16 %v3206_v17  ;;  %v4911_v23 = vld [vmem:[#allocation12_spill] sm:$0xff]  ;;  %p3505_p12 = pnand %p3504_p11, %p3673_p5  ;;  %p3512_p2 = por %p3511_p1, %p3510_p0 }
 0x137   : > { %v3213_v59 = vunpack.i.h.bf16 %v3211_v61  ;;  %v3212_v38 = vunpack.i.l.bf16 %v3211_v61  ;;  %v2898_v15 = vunpack.i.h.bf16 %v4911_v23  ;;  %v2897_v14 = vunpack.i.l.bf16 %v4911_v23  ;;  %v3493_v52 = vld [vmem:[#allocation2 + $0xc8] sm:$0xff] }
 0x138   : > { %v1755_v48 = vsel %vm1740_vm6, %v1722_v50, %v3207_v24  ;;  %v1756_v18 = vsel %vm1740_vm6, %v1723_v46, %v3208_v56  ;;  %v2973_v27 = vunpack.i.h.bf16 %v4912_v10  ;;  %v2972_v3 = vunpack.i.l.bf16 %v4912_v10  ;;  %p3506_p13 = pneg %p3505_p12 }
 0x139   : > { %v3216_v7 = vpop.permute.xlu1 %3215  ;;  %v1786_v1 = vsel %vm1773_vm7, %v1753_v58, %v3212_v38  ;;  %v1787_v26 = vsel %vm1773_vm7, %v1754_v54, %v3213_v59  ;;  %v2978_v25 = vunpack.i.h.bf16 %v4913_v49  ;;  %v2977_v59 = vunpack.i.l.bf16 %v4913_v49 }
 0x13a   : > { %v3221_v29 = vpop.permute.xlu0 %3220  ;;  %v3217_v35 = vunpack.i.l.bf16 %v3216_v7  ;;  %v3218_v51 = vunpack.i.h.bf16 %v3216_v7  ;;  %p3513_p3 = pnand %p3512_p2, %p3506_p13 }
 0x13b   : > { %v3223_v36 = vunpack.i.h.bf16 %v3221_v29  ;;  %v3222_v60 = vunpack.i.l.bf16 %v3221_v29  ;;  %v4910_v29 = vld [vmem:[#allocation11_spill] sm:$0xff] }
 0x13c   : > { %v1788_v55 = vsel %vm1773_vm7, %v1755_v48, %v3217_v35  ;;  %v1789_v17 = vsel %vm1773_vm7, %v1756_v18, %v3218_v51  ;;  %v2893_v11 = vunpack.i.h.bf16 %v4910_v29  ;;  %v2892_v2 = vunpack.i.l.bf16 %v4910_v29 }
 0x13d   : > { %v3226_v22 = vpop.permute.xlu1 %3225  ;;  %v1819_v0 = vsel %vm1806_vm8, %v1786_v1, %v3222_v60  ;;  %v1820_v5 = vsel %vm1806_vm8, %v1787_v26, %v3223_v36  ;;  %v3494_v36 = vld [vmem:[#allocation2 + $0xc0] sm:$0xff] }
 0x13e   : > { %v3231_v62 = vpop.permute.xlu0 %3230  ;;  %v3227_v37 = vunpack.i.l.bf16 %v3226_v22  ;;  %v3228_v6 = vunpack.i.h.bf16 %v3226_v22  ;;  %v1659_v24 = vsel %vm218_vm0, %v3493_v52, %v2893_v11  ;;  %v1658_v60 = vsel %vm218_vm0, %v3494_v36, %v2892_v2 }
 0x13f   : > { %v3233_v53 = vunpack.i.h.bf16 %v3231_v62  ;;  %v3232_v63 = vunpack.i.l.bf16 %v3231_v62  ;;  %v4914_v62 = vld [vmem:[#allocation18_spill] sm:$0xff]  ;;  %v1691_v26 = vsel %vm1674_vm4, %v1658_v60, %v2972_v3  ;;  %v1692_v51 = vsel %vm1674_vm4, %v1659_v24, %v2973_v27 }
 0x140   : > { %v1821_v9 = vsel %vm1806_vm8, %v1788_v55, %v3227_v37  ;;  %v1822_v12 = vsel %vm1806_vm8, %v1789_v17, %v3228_v6  ;;  %v1661_v50 = vsel %vm218_vm0, %v4914_v62, %v2898_v15 }
 0x141   : > { %v3236_v30 = vpop.permute.xlu1 %3235  ;;  %v1852_v33 = vsel %vm1839_vm9, %v1819_v0, %v3232_v63  ;;  %v1853_v40 = vsel %vm1839_vm9, %v1820_v5, %v3233_v53  ;;  %v4915_v63 = vld [vmem:[#allocation17_spill] sm:$0xff]  ;;  %v1694_v37 = vsel %vm1674_vm4, %v1661_v50, %v2978_v25 }
 0x142   : > { %v3241_v39 = vpop.permute.xlu0 %3240  ;;  %v3238_v44 = vunpack.i.h.bf16 %v3236_v30  ;;  %v3237_v41 = vunpack.i.l.bf16 %v3236_v30  ;;  %v1660_v1 = vsel %vm218_vm0, %v4915_v63, %v2897_v14 }
 0x143   : > { %v3243_v31 = vunpack.i.h.bf16 %v3241_v39  ;;  %v3242_v34 = vunpack.i.l.bf16 %v3241_v39  ;;  %v1693_v30 = vsel %vm1674_vm4, %v1660_v1, %v2977_v59 }
 0x144   : > { %v1854_v19 = vsel %vm1839_vm9, %v1821_v9, %v3237_v41  ;;  %v1855_v7 = vsel %vm1839_vm9, %v1822_v12, %v3238_v44 }
 0x145   : > { %v1885_v4 = vsel %vm1872_vm10, %v1852_v33, %v3242_v34  ;;  %v1886_v42 = vsel %vm1872_vm10, %v1853_v40, %v3243_v31  ;;  %v3246_v61 = vpop.permute.xlu1 %3245 }
 0x146   : > { %v1911_v21 = vpack.c.bf16 %v1886_v42, %v1885_v4  ;;  %v3248_v20 = vunpack.i.h.bf16 %v3246_v61  ;;  %v3247_v8 = vunpack.i.l.bf16 %v3246_v61  ;;  %v3251_v28 = vpop.permute.xlu0 %3250 }
 0x147   : > { %v3252_v38 = vunpack.i.l.bf16 %v3251_v28  ;;  %v3253_v46 = vunpack.i.h.bf16 %v3251_v28 }
 0x148   : > { %v1887_v57 = vsel %vm1872_vm10, %v1854_v19, %v3247_v8  ;;  %v1888_v47 = vsel %vm1872_vm10, %v1855_v7, %v3248_v20  ;;  %2768 = vmatprep.mubr.msk.bf16.mxu0 %vm1941_vm11, %v1911_v21 }
 0x149   : > { %v1912_v13 = vpack.c.bf16 %v1888_v47, %v1887_v57  ;;  %v3256_v32 = vpop.permute.xlu1 %3255  ;;  %v1724_v48 = vsel %vm1707_vm5, %v1691_v26, %v3252_v38  ;;  %v1725_v39 = vsel %vm1707_vm5, %v1692_v51, %v3253_v46  ;;  %v4918_v26 = vld [vmem:[#allocation21_spill] sm:$0xff] }
 0x14a   : > { %v3261_v45 = vpop.permute.xlu0 %3260  ;;  %v3258_v54 = vunpack.i.h.bf16 %v3256_v32  ;;  %v3257_v56 = vunpack.i.l.bf16 %v3256_v32  ;;  %v2983_v51 = vunpack.i.h.bf16 %v4918_v26 }
 0x14b   : > { %2769 = vmatmul.mubr.msk.bf16.gmra.mrb[12].mxu0 %vm1941_vm11, %v1912_v13  ;;  %v3263_v35 = vunpack.i.h.bf16 %v3261_v45  ;;  %v3262_v53 = vunpack.i.l.bf16 %v3261_v45 }
 0x14c   : > { %v1726_v18 = vsel %vm1707_vm5, %v1693_v30, %v3257_v56  ;;  %v1727_v55 = vsel %vm1707_vm5, %v1694_v37, %v3258_v54  ;;  %v2982_v37 = vunpack.i.l.bf16 %v4918_v26  ;;  %v4919_v30 = vld [vmem:[#allocation22_spill] sm:$0xff] }
 0x14d   : > { %v3266_v43 = vpop.permute.xlu1 %3265  ;;  %v1757_v33 = vsel %vm1740_vm6, %v1724_v48, %v3262_v53  ;;  %v1758_v40 = vsel %vm1740_vm6, %v1725_v39, %v3263_v35  ;;  %v4917_v35 = vld [vmem:[#allocation14_spill] sm:$0xff]  ;;  %v2988_v48 = vunpack.i.h.bf16 %v4919_v30 }
 0x14e   : > { %v3271_v16 = vpop.permute.xlu0 %3270  ;;  %v3267_v44 = vunpack.i.l.bf16 %v3266_v43  ;;  %v3268_v17 = vunpack.i.h.bf16 %v3266_v43  ;;  %v2908_v53 = vunpack.i.h.bf16 %v4917_v35  ;;  %v2907_v1 = vunpack.i.l.bf16 %v4917_v35  ;;  %v3495_v39 = vld [vmem:[#allocation2 + $0xf8] sm:$0xff] }
 0x14f   : > { %v3273_v0 = vunpack.i.h.bf16 %v3271_v16  ;;  %v3272_v5 = vunpack.i.l.bf16 %v3271_v16 }
 0x150   : > { %v1759_v28 = vsel %vm1740_vm6, %v1726_v18, %v3267_v44  ;;  %v1760_v29 = vsel %vm1740_vm6, %v1727_v55, %v3268_v17 }
 0x151   : > { %v3276_v22 = vpop.permute.xlu1 %3275  ;;  %v1790_v61 = vsel %vm1773_vm7, %v1757_v33, %v3272_v5  ;;  %v1791_v12 = vsel %vm1773_vm7, %v1758_v40, %v3273_v0  ;;  %v2987_v0 = vunpack.i.l.bf16 %v4919_v30 }
 0x152   : > { %v3281_v58 = vpop.permute.xlu0 %3280  ;;  %v3277_v9 = vunpack.i.l.bf16 %v3276_v22  ;;  %v3278_v21 = vunpack.i.h.bf16 %v3276_v22 }
 0x153   : > { %v3283_v41 = vunpack.i.h.bf16 %v3281_v58  ;;  %v3282_v31 = vunpack.i.l.bf16 %v3281_v58  ;;  %v4916_v58 = vld [vmem:[#allocation13_spill] sm:$0xff] }
 0x154   : > { %v1792_v11 = vsel %vm1773_vm7, %v1759_v28, %v3277_v9  ;;  %v1793_v15 = vsel %vm1773_vm7, %v1760_v29, %v3278_v21  ;;  %v2903_v54 = vunpack.i.h.bf16 %v4916_v58  ;;  %v2902_v56 = vunpack.i.l.bf16 %v4916_v58 }
 0x155   : > { %v3286_v6 = vpop.permute.xlu1 %3285  ;;  %v1823_v19 = vsel %vm1806_vm8, %v1790_v61, %v3282_v31  ;;  %v1824_v7 = vsel %vm1806_vm8, %v1791_v12, %v3283_v41  ;;  %v3496_v41 = vld [vmem:[#allocation2 + $0xf0] sm:$0xff] }
 0x156   : > { %v3291_v34 = vpop.permute.xlu0 %3290  ;;  %v3287_v20 = vunpack.i.l.bf16 %v3286_v6  ;;  %v3288_v57 = vunpack.i.h.bf16 %v3286_v6  ;;  %v1663_v44 = vsel %vm218_vm0, %v3495_v39, %v2903_v54  ;;  %v1662_v31 = vsel %vm218_vm0, %v3496_v41, %v2902_v56 }
 0x157   : > { %v3293_v4 = vunpack.i.h.bf16 %v3291_v34  ;;  %v3292_v42 = vunpack.i.l.bf16 %v3291_v34  ;;  %v3497_v34 = vld [vmem:[#allocation2 + $0x110] sm:$0xff]  ;;  %v1695_v12 = vsel %vm1674_vm4, %v1662_v31, %v2982_v37  ;;  %v1696_v21 = vsel %vm1674_vm4, %v1663_v44, %v2983_v51 }
 0x158   : > { %v1825_v16 = vsel %vm1806_vm8, %v1792_v11, %v3287_v20  ;;  %v1826_v3 = vsel %vm1806_vm8, %v1793_v15, %v3288_v57  ;;  %v1665_v18 = vsel %vm218_vm0, %v3497_v34, %v2908_v53 }
 0x159   : > { %v3296_v8 = vpop.permute.xlu1 %3295  ;;  %v1856_v2 = vsel %vm1839_vm9, %v1823_v19, %v3292_v42  ;;  %v1857_v23 = vsel %vm1839_vm9, %v1824_v7, %v3293_v4  ;;  %v3498_v42 = vld [vmem:[#allocation2 + $0x108] sm:$0xff]  ;;  %v1698_v20 = vsel %vm1674_vm4, %v1665_v18, %v2988_v48 }
 0x15a   : > { %v3301_v47 = vpop.permute.xlu0 %3300  ;;  %v3298_v13 = vunpack.i.h.bf16 %v3296_v8  ;;  %v3297_v32 = vunpack.i.l.bf16 %v3296_v8  ;;  %v1664_v61 = vsel %vm218_vm0, %v3498_v42, %v2907_v1 }
 0x15b   : > { %v3303_v45 = vunpack.i.h.bf16 %v3301_v47  ;;  %v3302_v43 = vunpack.i.l.bf16 %v3301_v47  ;;  %v1697_v8 = vsel %vm1674_vm4, %v1664_v61, %v2987_v0 }
 0x15c   : > { %v1858_v22 = vsel %vm1839_vm9, %v1825_v16, %v3297_v32  ;;  %v1859_v52 = vsel %vm1839_vm9, %v1826_v3, %v3298_v13 }
 0x15d   : > { %v3306_v14 = vpop.permute.xlu1 %3305  ;;  %v1889_v10 = vsel %vm1872_vm10, %v1856_v2, %v3302_v43  ;;  %v1890_v27 = vsel %vm1872_vm10, %v1857_v23, %v3303_v45 }
 0x15e   : > { %v3308_v49 = vunpack.i.h.bf16 %v3306_v14  ;;  %v3307_v25 = vunpack.i.l.bf16 %v3306_v14  ;;  %v3311_v59 = vpop.permute.xlu0 %3310  ;;  %v1913_v38 = vpack.c.bf16 %v1890_v27, %v1889_v10 }
 0x15f   : > { %v3312_v5 = vunpack.i.l.bf16 %v3311_v59  ;;  %v3313_v55 = vunpack.i.h.bf16 %v3311_v59 }
 0x160   : > { %v1891_v24 = vsel %vm1872_vm10, %v1858_v22, %v3307_v25  ;;  %v1892_v36 = vsel %vm1872_vm10, %v1859_v52, %v3308_v49  ;;  %2772 = vmatprep.mubr.msk.bf16.mxu1 %vm1941_vm11, %v1913_v38 }
 0x161   : > { %v1914_v60 = vpack.c.bf16 %v1892_v36, %v1891_v24  ;;  %v3316_v62 = vpop.permute.xlu1 %3315  ;;  %v1728_v28 = vsel %vm1707_vm5, %v1695_v12, %v3312_v5  ;;  %v1729_v47 = vsel %vm1707_vm5, %v1696_v21, %v3313_v55  ;;  %v4922_v12 = vld [vmem:[#allocation23_spill] sm:$0xff] }
 0x162   : > { %v3321_v50 = vpop.permute.xlu0 %3320  ;;  %v3318_v40 = vunpack.i.h.bf16 %v3316_v62  ;;  %v3317_v17 = vunpack.i.l.bf16 %v3316_v62  ;;  %v2993_v21 = vunpack.i.h.bf16 %v4922_v12 }
 0x163   : > { %2773 = vmatmul.mubr.msk.bf16.vlgmr.msra.gmra.mrb[0].mxu1 %vm1941_vm11, %v1914_v60  ;;  %v3323_v9 = vunpack.i.h.bf16 %v3321_v50  ;;  %v3322_v4 = vunpack.i.l.bf16 %v3321_v50 }
 0x164   : > { %v1730_v29 = vsel %vm1707_vm5, %v1697_v8, %v3317_v17  ;;  %v1731_v11 = vsel %vm1707_vm5, %v1698_v20, %v3318_v40  ;;  %v2992_v20 = vunpack.i.l.bf16 %v4922_v12  ;;  %v4923_v8 = vld [vmem:[#allocation24_spill] sm:$0xff] }
 0x165   : > { %v4522_v46 = vpop.permute.xlu1 %3325  ;;  %v1761_v2 = vsel %vm1740_vm6, %v1728_v28, %v3322_v4  ;;  %v1762_v23 = vsel %vm1740_vm6, %v1729_v47, %v3323_v9  ;;  %v4921_v9 = vld [vmem:[#allocation16_spill] sm:$0xff]  ;;  %v2998_v28 = vunpack.i.h.bf16 %v4923_v8 }
 0x166   : > { %v3331_v63 = vpop.permute.xlu0 %3330  ;;  %v3327_v13 = vunpack.i.l.bf16 %v4522_v46  ;;  %v3328_v15 = vunpack.i.h.bf16 %v4522_v46  ;;  %v2918_v4 = vunpack.i.h.bf16 %v4921_v9  ;;  %v2917_v61 = vunpack.i.l.bf16 %v4921_v9  ;;  %v3499_v47 = vld [vmem:[#allocation2 + $0x128] sm:$0xff] }
 0x167   : > { %v3333_v19 = vunpack.i.h.bf16 %v3331_v63  ;;  %v3332_v7 = vunpack.i.l.bf16 %v3331_v63 }
 0x168   : > { %v1763_v38 = vsel %vm1740_vm6, %v1730_v29, %v3327_v13  ;;  %v1764_v58 = vsel %vm1740_vm6, %v1731_v11, %v3328_v15 }
 0x169   : > { %v3336_v6 = vpop.permute.xlu1 %3335  ;;  %v1794_v27 = vsel %vm1773_vm7, %v1761_v2, %v3332_v7  ;;  %v1795_v3 = vsel %vm1773_vm7, %v1762_v23, %v3333_v19  ;;  %v2997_v19 = vunpack.i.l.bf16 %v4923_v8 }
 0x16a   : > { %v3341_v33 = vpop.permute.xlu0 %3340  ;;  %v3337_v16 = vunpack.i.l.bf16 %v3336_v6  ;;  %v3338_v49 = vunpack.i.h.bf16 %v3336_v6 }
 0x16b   : > { %v3343_v32 = vunpack.i.h.bf16 %v3341_v33  ;;  %v3342_v45 = vunpack.i.l.bf16 %v3341_v33  ;;  %v4920_v33 = vld [vmem:[#allocation15_spill] sm:$0xff] }
 0x16c   : > { %v1796_v54 = vsel %vm1773_vm7, %v1763_v38, %v3337_v16  ;;  %v1797_v53 = vsel %vm1773_vm7, %v1764_v58, %v3338_v49  ;;  %v2913_v40 = vunpack.i.h.bf16 %v4920_v33  ;;  %v2912_v17 = vunpack.i.l.bf16 %v4920_v33 }
 0x16d   : > { %v3346_v57 = vpop.permute.xlu1 %3345  ;;  %v1827_v22 = vsel %vm1806_vm8, %v1794_v27, %v3342_v45  ;;  %v1828_v52 = vsel %vm1806_vm8, %v1795_v3, %v3343_v32  ;;  %v3500_v32 = vld [vmem:[#allocation2 + $0x120] sm:$0xff] }
 0x16e   : > { %v3351_v43 = vpop.permute.xlu0 %3350  ;;  %v3347_v25 = vunpack.i.l.bf16 %v3346_v57  ;;  %v3348_v24 = vunpack.i.h.bf16 %v3346_v57  ;;  %v1667_v13 = vsel %vm218_vm0, %v3499_v47, %v2913_v40  ;;  %v1666_v45 = vsel %vm218_vm0, %v3500_v32, %v2912_v17 }
 0x16f   : > { %v3353_v14 = vunpack.i.h.bf16 %v3351_v43  ;;  %v3352_v10 = vunpack.i.l.bf16 %v3351_v43  ;;  %v3501_v43 = vld [vmem:[#allocation2 + $0x140] sm:$0xff]  ;;  %v1699_v3 = vsel %vm1674_vm4, %v1666_v45, %v2992_v20  ;;  %v1700_v49 = vsel %vm1674_vm4, %v1667_v13, %v2993_v21 }
 0x170   : > { %v1829_v63 = vsel %vm1806_vm8, %v1796_v54, %v3347_v25  ;;  %v1830_v37 = vsel %vm1806_vm8, %v1797_v53, %v3348_v24  ;;  %v1669_v29 = vsel %vm218_vm0, %v3501_v43, %v2918_v4 }
 0x171   : > { %v3356_v59 = vpop.permute.xlu1 %3355  ;;  %v1860_v56 = vsel %vm1839_vm9, %v1827_v22, %v3352_v10  ;;  %v1861_v35 = vsel %vm1839_vm9, %v1828_v52, %v3353_v14  ;;  %v3502_v10 = vld [vmem:[#allocation2 + $0x138] sm:$0xff]  ;;  %v1702_v25 = vsel %vm1674_vm4, %v1669_v29, %v2998_v28 }
 0x172   : > { %v3361_v36 = vpop.permute.xlu0 %3360  ;;  %v3358_v60 = vunpack.i.h.bf16 %v3356_v59  ;;  %v3357_v62 = vunpack.i.l.bf16 %v3356_v59  ;;  %v1668_v27 = vsel %vm218_vm0, %v3502_v10, %v2917_v61 }
 0x173   : > { %v3363_v50 = vunpack.i.h.bf16 %v3361_v36  ;;  %v3362_v46 = vunpack.i.l.bf16 %v3361_v36  ;;  %v1701_v59 = vsel %vm1674_vm4, %v1668_v27, %v2997_v19 }
 0x174   : > { %v1862_v6 = vsel %vm1839_vm9, %v1829_v63, %v3357_v62  ;;  %v1863_v39 = vsel %vm1839_vm9, %v1830_v37, %v3358_v60 }
 0x175   : > { %v1893_v1 = vsel %vm1872_vm10, %v1860_v56, %v3362_v46  ;;  %v1894_v26 = vsel %vm1872_vm10, %v1861_v35, %v3363_v50  ;;  %v3366_v51 = vpop.permute.xlu1 %3365 }
 0x176   : > { %v1915_v30 = vpack.c.bf16 %v1894_v26, %v1893_v1  ;;  %v3368_v48 = vunpack.i.h.bf16 %v3366_v51  ;;  %v3367_v0 = vunpack.i.l.bf16 %v3366_v51  ;;  %v3371_v5 = vpop.permute.xlu0 %3370 }
 0x177   : > { %v3372_v7 = vunpack.i.l.bf16 %v3371_v5  ;;  %v3373_v11 = vunpack.i.h.bf16 %v3371_v5 }
 0x178   : > { %v1895_v44 = vsel %vm1872_vm10, %v1862_v6, %v3367_v0  ;;  %v1896_v41 = vsel %vm1872_vm10, %v1863_v39, %v3368_v48  ;;  %2776 = vmatprep.mubr.msk.bf16.mxu1 %vm1941_vm11, %v1915_v30 }
 0x179   : > { %v1916_v31 = vpack.c.bf16 %v1896_v41, %v1895_v44  ;;  %v3376_v34 = vpop.permute.xlu1 %3375  ;;  %v1732_v38 = vsel %vm1707_vm5, %v1699_v3, %v3372_v7  ;;  %v1733_v36 = vsel %vm1707_vm5, %v1700_v49, %v3373_v11 }
 0x17a   : > { %v3381_v18 = vpop.permute.xlu0 %3380  ;;  %v3378_v23 = vunpack.i.h.bf16 %v3376_v34  ;;  %v3377_v15 = vunpack.i.l.bf16 %v3376_v34 }
 0x17b   : > { %2777 = vmatmul.mubr.msk.bf16.gmra.mrb[4].mxu1 %vm1941_vm11, %v1916_v31  ;;  %v3383_v16 = vunpack.i.h.bf16 %v3381_v18  ;;  %v3382_v14 = vunpack.i.l.bf16 %v3381_v18 }
 0x17c   : > { %v1734_v58 = vsel %vm1707_vm5, %v1701_v59, %v3377_v15  ;;  %v1735_v54 = vsel %vm1707_vm5, %v1702_v25, %v3378_v23  ;;  %v4924_v25 = vld [vmem:[#allocation25_spill] sm:$0xff] }
 0x17d   : > { %v4568_v55 = vpop.permute.xlu1 %3385  ;;  %v1765_v56 = vsel %vm1740_vm6, %v1732_v38, %v3382_v14  ;;  %v1766_v35 = vsel %vm1740_vm6, %v1733_v36, %v3383_v16 }
 0x17e   : > { %v3391_v42 = vpop.permute.xlu0 %3390  ;;  %v3387_v60 = vunpack.i.l.bf16 %v4568_v55  ;;  %v3388_v53 = vunpack.i.h.bf16 %v4568_v55 }
 0x17f   : > { %v3393_v22 = vunpack.i.h.bf16 %v3391_v42  ;;  %v3392_v52 = vunpack.i.l.bf16 %v3391_v42 }
 0x180   : > { %v1767_v5 = vsel %vm1740_vm6, %v1734_v58, %v3387_v60  ;;  %v1768_v33 = vsel %vm1740_vm6, %v1735_v54, %v3388_v53  ;;  %v4926_v58 = vld [vmem:[#allocation28_spill] sm:$0xff] }
 0x181   : > { %v3396_v57 = vpop.permute.xlu1 %3395  ;;  %v1798_v51 = vsel %vm1773_vm7, %v1765_v56, %v3392_v52  ;;  %v1799_v37 = vsel %vm1773_vm7, %v1766_v35, %v3393_v22  ;;  %v4927_v56 = vld [vmem:[#allocation27_spill] sm:$0xff] }
 0x182   : > { %v3401_v2 = vpop.permute.xlu0 %3400  ;;  %v3397_v63 = vunpack.i.l.bf16 %v3396_v57  ;;  %v3398_v30 = vunpack.i.h.bf16 %v3396_v57 }
 0x183   : > { %v3403_v62 = vunpack.i.h.bf16 %v3401_v2  ;;  %v3402_v50 = vunpack.i.l.bf16 %v3401_v2 }
 0x184   : > { %v1800_v40 = vsel %vm1773_vm7, %v1767_v5, %v3397_v63  ;;  %v1801_v4 = vsel %vm1773_vm7, %v1768_v33, %v3398_v30 }
 0x185   : > { %v3406_v24 = vpop.permute.xlu1 %3405  ;;  %v1831_v6 = vsel %vm1806_vm8, %v1798_v51, %v3402_v50  ;;  %v1832_v39 = vsel %vm1806_vm8, %v1799_v37, %v3403_v62 }
 0x186   : > { %v3411_v46 = vpop.permute.xlu0 %3410  ;;  %v3407_v48 = vunpack.i.l.bf16 %v3406_v24  ;;  %v3408_v44 = vunpack.i.h.bf16 %v3406_v24  ;;  %v4925_v24 = vld [vmem:[#allocation26_spill] sm:$0xff] }
 0x187   : > { %v3413_v1 = vunpack.i.h.bf16 %v3411_v46  ;;  %v3412_v26 = vunpack.i.l.bf16 %v3411_v46 }
 0x188   : > { %v1833_v42 = vsel %vm1806_vm8, %v1800_v40, %v3407_v48  ;;  %v1834_v20 = vsel %vm1806_vm8, %v1801_v4, %v3408_v44 }
 0x189   : > { %v3416_v0 = vpop.permute.xlu1 %3415  ;;  %v1864_v17 = vsel %vm1839_vm9, %v1831_v6, %v3412_v26  ;;  %v1865_v9 = vsel %vm1839_vm9, %v1832_v39, %v3413_v1 }
 0x18a   : > { %v3421_v41 = vpop.permute.xlu0 %3420  ;;  %v3418_v31 = vunpack.i.h.bf16 %v3416_v0  ;;  %v3417_v34 = vunpack.i.l.bf16 %v3416_v0 }
 0x18b   : > { %v3423_v18 = vunpack.i.h.bf16 %v3421_v41  ;;  %v3422_v55 = vunpack.i.l.bf16 %v3421_v41 }
 0x18c   : > { %v1866_v57 = vsel %vm1839_vm9, %v1833_v42, %v3417_v34  ;;  %v1867_v47 = vsel %vm1839_vm9, %v1834_v20, %v3418_v31 }
 0x18d   : > { %v1897_v61 = vsel %vm1872_vm10, %v1864_v17, %v3422_v55  ;;  %v1898_v12 = vsel %vm1872_vm10, %v1865_v9, %v3423_v18  ;;  %v3426_v21 = vpop.permute.xlu1 %3425 }
 0x18e   : > { %v1917_v8 = vpack.c.bf16 %v1898_v12, %v1897_v61  ;;  %v3428_v28 = vunpack.i.h.bf16 %v3426_v21  ;;  %v3427_v19 = vunpack.i.l.bf16 %v3426_v21  ;;  %v3431_v7 = vpop.permute.xlu0 %3430 }
 0x18f   : > { %v3432_v23 = vunpack.i.l.bf16 %v3431_v7  ;;  %v3433_v16 = vunpack.i.h.bf16 %v3431_v7 }
 0x190   : > { %v1899_v13 = vsel %vm1872_vm10, %v1866_v57, %v3427_v19  ;;  %v1900_v32 = vsel %vm1872_vm10, %v1867_v47, %v3428_v28  ;;  %2780 = vmatprep.mubr.msk.bf16.mxu1 %vm1941_vm11, %v1917_v8 }
 0x191   : > { %v1918_v45 = vpack.c.bf16 %v1900_v32, %v1899_v13  ;;  %v3436_v43 = vpop.permute.xlu1 %3435  ;;  %v1736_v59 = vsel %vm1707_vm5, %v4924_v25, %v3432_v23  ;;  %v1737_v36 = vsel %vm1707_vm5, %v4925_v24, %v3433_v16 }
 0x192   : > { %v3441_v29 = vpop.permute.xlu0 %3440  ;;  %v3438_v10 = vunpack.i.h.bf16 %v3436_v43  ;;  %v3437_v27 = vunpack.i.l.bf16 %v3436_v43 }
 0x193   : > { %2781 = vmatmul.mubr.msk.bf16.gmra.mrb[8].mxu1 %vm1941_vm11, %v1918_v45  ;;  %v3443_v3 = vunpack.i.h.bf16 %v3441_v29  ;;  %v3442_v49 = vunpack.i.l.bf16 %v3441_v29 }
 0x194   : > { %v1738_v54 = vsel %vm1707_vm5, %v4926_v58, %v3437_v27  ;;  %v1739_v35 = vsel %vm1707_vm5, %v4927_v56, %v3438_v10 }
 0x195   : > { %v3446_v11 = vpop.permute.xlu1 %3445  ;;  %v1769_v53 = vsel %vm1740_vm6, %v1736_v59, %v3442_v49  ;;  %v1770_v63 = vsel %vm1740_vm6, %v1737_v36, %v3443_v3 }
 0x196   : > { %v3451_v2 = vpop.permute.xlu0 %3450  ;;  %v3447_v60 = vunpack.i.l.bf16 %v3446_v11  ;;  %v3448_v1 = vunpack.i.h.bf16 %v3446_v11 }
 0x197   : > { %v3453_v38 = vunpack.i.h.bf16 %v3451_v2  ;;  %v3452_v22 = vunpack.i.l.bf16 %v3451_v2 }
 0x198   : > { %v1771_v39 = vsel %vm1740_vm6, %v1738_v54, %v3447_v60  ;;  %v1772_v17 = vsel %vm1740_vm6, %v1739_v35, %v3448_v1 }
 0x199   : > { %v3456_v15 = vpop.permute.xlu1 %3455  ;;  %v1802_v30 = vsel %vm1773_vm7, %v1769_v53, %v3452_v22  ;;  %v1803_v48 = vsel %vm1773_vm7, %v1770_v63, %v3453_v38 }
 0x19a   : > { %v3461_v14 = vpop.permute.xlu0 %3460  ;;  %v3457_v26 = vunpack.i.l.bf16 %v3456_v15  ;;  %v3458_v0 = vunpack.i.h.bf16 %v3456_v15 }
 0x19b   : > { %v3463_v62 = vunpack.i.h.bf16 %v3461_v14  ;;  %v3462_v50 = vunpack.i.l.bf16 %v3461_v14 }
 0x19c   : > { %v1804_v9 = vsel %vm1773_vm7, %v1771_v39, %v3457_v26  ;;  %v1805_v61 = vsel %vm1773_vm7, %v1772_v17, %v3458_v0 }
 0x19d   : > { %v3466_v52 = vpop.permute.xlu1 %3465  ;;  %v1835_v44 = vsel %vm1806_vm8, %v1802_v30, %v3462_v50  ;;  %v1836_v41 = vsel %vm1806_vm8, %v1803_v48, %v3463_v62 }
 0x19e   : > { %v3471_v46 = vpop.permute.xlu0 %3470  ;;  %v3467_v5 = vunpack.i.l.bf16 %v3466_v52  ;;  %v3468_v31 = vunpack.i.h.bf16 %v3466_v52 }
 0x19f   : > { %v3473_v51 = vunpack.i.h.bf16 %v3471_v46  ;;  %v3472_v37 = vunpack.i.l.bf16 %v3471_v46 }
 0x1a0   : > { %v1837_v12 = vsel %vm1806_vm8, %v1804_v9, %v3467_v5  ;;  %v1838_v28 = vsel %vm1806_vm8, %v1805_v61, %v3468_v31 }
 0x1a1   : > { %v3476_v6 = vpop.permute.xlu1 %3475  ;;  %v1868_v4 = vsel %vm1839_vm9, %v1835_v44, %v3472_v37  ;;  %v1869_v42 = vsel %vm1839_vm9, %v1836_v41, %v3473_v51 }
 0x1a2   : > { %v3481_v34 = vpop.permute.xlu0 %3480  ;;  %v3478_v18 = vunpack.i.h.bf16 %v3476_v6  ;;  %v3477_v55 = vunpack.i.l.bf16 %v3476_v6 }
 0x1a3   : > { %v3483_v33 = vunpack.i.h.bf16 %v3481_v34  ;;  %v3482_v40 = vunpack.i.l.bf16 %v3481_v34 }
 0x1a4   : > { %v1870_v47 = vsel %vm1839_vm9, %v1837_v12, %v3477_v55  ;;  %v1871_v13 = vsel %vm1839_vm9, %v1838_v28, %v3478_v18 }
 0x1a5   : > { %v1901_v21 = vsel %vm1872_vm10, %v1868_v4, %v3482_v40  ;;  %v1902_v20 = vsel %vm1872_vm10, %v1869_v42, %v3483_v33  ;;  %v3486_v8 = vpop.permute.xlu1 %3485 }
 0x1a6   : > { %v1919_v19 = vpack.c.bf16 %v1902_v20, %v1901_v21  ;;  %v3488_v7 = vunpack.i.h.bf16 %v3486_v8  ;;  %v3487_v57 = vunpack.i.l.bf16 %v3486_v8 }
 0x1a8   : > { %v1903_v32 = vsel %vm1872_vm10, %v1870_v47, %v3487_v57  ;;  %v1904_v45 = vsel %vm1872_vm10, %v1871_v13, %v3488_v7  ;;  %2784 = vmatprep.mubr.msk.bf16.mxu1 %vm1941_vm11, %v1919_v19 }
 0x1a9   : > { %v1920_v43 = vpack.c.bf16 %v1904_v45, %v1903_v32 }
 0x1ab   : > { %2785 = vmatmul.mubr.msk.bf16.gmra.mrb[12].mxu1 %vm1941_vm11, %v1920_v43 }
 0x1df   : > { %v2758_v29 = vpop.f32.mrb[0].mxu0 }
 0x1e0   : > { %v2701_v11 = vpack.c.bf16 %v2758_v29, %v2758_v29  ;;  %v2028_v2 = vpop.f32.mrb[1].mxu0  ;;  %v2388_v14 = vmul.f32 %v2758_v29, %v2758_v29  ;;  %v2319_v22 = vsel %vm218_vm0, %v2758_v29, 0.0 }
 0x1e1   : > { %v2699_v23 = vpack.c.bf16 %v2028_v2, %v2028_v2  ;;  %v2386_v15 = vmul.f32 %v2028_v2, %v2028_v2  ;;  %v2759_v16 = vpop.f32.mrb[2].mxu0  ;;  %v2316_v3 = vsel %vm218_vm0, %v2028_v2, 0.0 }
 0x1e2   : > { %2286 = vst.msk [vmem:[%s4648_s7 + $0x8] sm:$0xf] %vm2283_vm12, %v2701_v11  ;;  %v2702_v10 = vpack.c.bf16 %v2759_v16, %v2759_v16  ;;  %v2031_v27 = vpop.f32.mrb[3].mxu0  ;;  %v2389_v24 = vmul.f32 %v2759_v16, %v2759_v16  ;;  %v2421_v50 = vsel %vm218_vm0, %v2388_v14, 0.0  ;;  %v2321_v46 = vsel %vm218_vm0, %v2759_v16, 0.0 }
 0x1e3   : > { %2284 = vst.msk [vmem:[%s4648_s7] sm:$0xf] %vm2283_vm12, %v2699_v23  ;;  %v2700_v49 = vpack.c.bf16 %v2031_v27, %v2031_v27  ;;  %v2317_v25 = vsel %vm218_vm0, %v2031_v27, 0.0  ;;  %v2387_v59 = vmul.f32 %v2031_v27, %v2031_v27  ;;  %v2418_v52 = vsel %vm218_vm0, %v2386_v15, 0.0 }
 0x1e4   : > { %2287 = vst.msk [vmem:[%s4648_s7 + $0xc] sm:$0xf] %vm2283_vm12, %v2702_v10  ;;  %v2318_v38 = vadd.f32 %v2317_v25, %v2316_v3  ;;  %v2423_v56 = vsel %vm218_vm0, %v2389_v24, 0.0 }
 0x1e5   : > { %2285 = vst.msk [vmem:[%s4648_s7 + $0x4] sm:$0xf] %vm2283_vm12, %v2700_v49  ;;  %v2419_v36 = vsel %vm218_vm0, %v2387_v59, 0.0 }
 0x1e6   : > { %v2320_v60 = vadd.f32 %v2319_v22, %v2318_v38  ;;  %v2420_v62 = vadd.f32 %v2419_v36, %v2418_v52 }
 0x1e8   : > { %v2422_v58 = vadd.f32 %v2421_v50, %v2420_v62  ;;  %v2322_v54 = vadd.f32 %v2321_v46, %v2320_v60 }
 0x1ea   : > { %v2424_v35 = vadd.f32 %v2423_v56, %v2422_v58 }
 0x1f3   : > { %v2762_v53 = vpop.f32.mrb[4].mxu0 }
 0x1f4   : > { %v2705_v63 = vpack.c.bf16 %v2762_v53, %v2762_v53  ;;  %v2044_v1 = vpop.f32.mrb[5].mxu0  ;;  %v2392_v41 = vmul.f32 %v2762_v53, %v2762_v53  ;;  %v2327_v55 = vsel %vm218_vm0, %v2762_v53, 0.0 }
 0x1f5   : > { %v2703_v26 = vpack.c.bf16 %v2044_v1, %v2044_v1  ;;  %v2323_v51 = vsel %vm218_vm0, %v2044_v1, 0.0  ;;  %v2390_v37 = vmul.f32 %v2044_v1, %v2044_v1  ;;  %v2763_v30 = vpop.f32.mrb[6].mxu0 }
 0x1f6   : > { %2290 = vst.msk [vmem:[%s4648_s7 + $0x18] sm:$0xf] %vm2283_vm12, %v2705_v63  ;;  %v2324_v48 = vadd.f32 %v2323_v51, %v2322_v54  ;;  %v2706_v0 = vpack.c.bf16 %v2763_v30, %v2763_v30  ;;  %v2047_v5 = vpop.f32.mrb[7].mxu0  ;;  %v2393_v33 = vmul.f32 %v2763_v30, %v2763_v30  ;;  %v2329_v9 = vsel %vm218_vm0, %v2763_v30, 0.0 }
 0x1f7   : > { %2288 = vst.msk [vmem:[%s4648_s7 + $0x10] sm:$0xf] %vm2283_vm12, %v2703_v26  ;;  %v2425_v6 = vsel %vm218_vm0, %v2390_v37, 0.0  ;;  %v2704_v39 = vpack.c.bf16 %v2047_v5, %v2047_v5  ;;  %v2325_v44 = vsel %vm218_vm0, %v2047_v5, 0.0  ;;  %v2391_v18 = vmul.f32 %v2047_v5, %v2047_v5 }
 0x1f8   : > { %v2426_v31 = vadd.f32 %v2425_v6, %v2424_v35  ;;  %2291 = vst.msk [vmem:[%s4648_s7 + $0x1c] sm:$0xf] %vm2283_vm12, %v2706_v0  ;;  %v2326_v34 = vadd.f32 %v2325_v44, %v2324_v48  ;;  %v2429_v42 = vsel %vm218_vm0, %v2392_v41, 0.0  ;;  %v2431_v21 = vsel %vm218_vm0, %v2393_v33, 0.0 }
 0x1f9   : > { %2289 = vst.msk [vmem:[%s4648_s7 + $0x14] sm:$0xf] %vm2283_vm12, %v2704_v39  ;;  %v2427_v17 = vsel %vm218_vm0, %v2391_v18, 0.0 }
 0x1fa   : > { %v2328_v40 = vadd.f32 %v2327_v55, %v2326_v34  ;;  %v2428_v4 = vadd.f32 %v2427_v17, %v2426_v31 }
 0x1fc   : > { %v2330_v61 = vadd.f32 %v2329_v9, %v2328_v40  ;;  %v2430_v12 = vadd.f32 %v2429_v42, %v2428_v4 }
 0x1fe   : > { %v2432_v20 = vadd.f32 %v2431_v21, %v2430_v12 }
 0x207   : > { %v2766_v8 = vpop.f32.mrb[8].mxu0 }
 0x208   : > { %v2709_v28 = vpack.c.bf16 %v2766_v8, %v2766_v8  ;;  %v2060_v19 = vpop.f32.mrb[9].mxu0  ;;  %v2396_v23 = vmul.f32 %v2766_v8, %v2766_v8  ;;  %v2335_v10 = vsel %vm218_vm0, %v2766_v8, 0.0 }
 0x209   : > { %v2707_v7 = vpack.c.bf16 %v2060_v19, %v2060_v19  ;;  %v2331_v57 = vsel %vm218_vm0, %v2060_v19, 0.0  ;;  %v2394_v47 = vmul.f32 %v2060_v19, %v2060_v19  ;;  %v2767_v13 = vpop.f32.mrb[10].mxu0 }
 0x20a   : > { %2294 = vst.msk [vmem:[%s4648_s7 + $0x28] sm:$0xf] %vm2283_vm12, %v2709_v28  ;;  %v2332_v32 = vadd.f32 %v2331_v57, %v2330_v61  ;;  %v2710_v45 = vpack.c.bf16 %v2767_v13, %v2767_v13  ;;  %v2063_v43 = vpop.f32.mrb[11].mxu0  ;;  %v2397_v27 = vmul.f32 %v2767_v13, %v2767_v13  ;;  %v2337_v25 = vsel %vm218_vm0, %v2767_v13, 0.0 }
 0x20b   : > { %2292 = vst.msk [vmem:[%s4648_s7 + $0x20] sm:$0xf] %vm2283_vm12, %v2707_v7  ;;  %v2433_v29 = vsel %vm218_vm0, %v2394_v47, 0.0  ;;  %v2708_v11 = vpack.c.bf16 %v2063_v43, %v2063_v43  ;;  %v2333_v2 = vsel %vm218_vm0, %v2063_v43, 0.0  ;;  %v2395_v14 = vmul.f32 %v2063_v43, %v2063_v43 }
 0x20c   : > { %v2434_v15 = vadd.f32 %v2433_v29, %v2432_v20  ;;  %2295 = vst.msk [vmem:[%s4648_s7 + $0x2c] sm:$0xf] %vm2283_vm12, %v2710_v45  ;;  %v2334_v16 = vadd.f32 %v2333_v2, %v2332_v32  ;;  %v2437_v38 = vsel %vm218_vm0, %v2396_v23, 0.0  ;;  %v2439_v24 = vsel %vm218_vm0, %v2397_v27, 0.0 }
 0x20d   : > { %2293 = vst.msk [vmem:[%s4648_s7 + $0x24] sm:$0xf] %vm2283_vm12, %v2708_v11  ;;  %v2435_v49 = vsel %vm218_vm0, %v2395_v14, 0.0 }
 0x20e   : > { %v2336_v3 = vadd.f32 %v2335_v10, %v2334_v16  ;;  %v2436_v59 = vadd.f32 %v2435_v49, %v2434_v15 }
 0x210   : > { %v2338_v22 = vadd.f32 %v2337_v25, %v2336_v3  ;;  %v2438_v52 = vadd.f32 %v2437_v38, %v2436_v59 }
 0x212   : > { %v2440_v36 = vadd.f32 %v2439_v24, %v2438_v52 }
 0x21e   : > { %v2770_v60 = vpop.f32.mrb[12].mxu0 }
 0x21f   : > { %v2713_v62 = vpack.c.bf16 %v2770_v60, %v2770_v60  ;;  %v2076_v50 = vpop.f32.mrb[13].mxu0  ;;  %v2400_v37 = vmul.f32 %v2770_v60, %v2770_v60  ;;  %v2343_v5 = vsel %vm218_vm0, %v2770_v60, 0.0 }
 0x220   : > { %v2711_v46 = vpack.c.bf16 %v2076_v50, %v2076_v50  ;;  %v2339_v58 = vsel %vm218_vm0, %v2076_v50, 0.0  ;;  %v2398_v54 = vmul.f32 %v2076_v50, %v2076_v50  ;;  %v2771_v56 = vpop.f32.mrb[14].mxu0 }
 0x221   : > { %2298 = vst.msk [vmem:[%s4648_s7 + $0x38] sm:$0xf] %vm2283_vm12, %v2713_v62  ;;  %v2340_v35 = vadd.f32 %v2339_v58, %v2338_v22  ;;  %v2714_v53 = vpack.c.bf16 %v2771_v56, %v2771_v56  ;;  %v2079_v63 = vpop.f32.mrb[15].mxu0  ;;  %v2401_v6 = vmul.f32 %v2771_v56, %v2771_v56  ;;  %v2345_v41 = vsel %vm218_vm0, %v2771_v56, 0.0 }
 0x222   : > { %2296 = vst.msk [vmem:[%s4648_s7 + $0x30] sm:$0xf] %vm2283_vm12, %v2711_v46  ;;  %v2441_v1 = vsel %vm218_vm0, %v2398_v54, 0.0  ;;  %v2712_v26 = vpack.c.bf16 %v2079_v63, %v2079_v63  ;;  %v2341_v51 = vsel %vm218_vm0, %v2079_v63, 0.0  ;;  %v2399_v0 = vmul.f32 %v2079_v63, %v2079_v63 }
 0x223   : > { %v2442_v30 = vadd.f32 %v2441_v1, %v2440_v36  ;;  %2299 = vst.msk [vmem:[%s4648_s7 + $0x3c] sm:$0xf] %vm2283_vm12, %v2714_v53  ;;  %v2342_v48 = vadd.f32 %v2341_v51, %v2340_v35  ;;  %v2445_v34 = vsel %vm218_vm0, %v2400_v37, 0.0  ;;  %v2447_v33 = vsel %vm218_vm0, %v2401_v6, 0.0 }
 0x224   : > { %2297 = vst.msk [vmem:[%s4648_s7 + $0x34] sm:$0xf] %vm2283_vm12, %v2712_v26  ;;  %v2443_v44 = vsel %vm218_vm0, %v2399_v0, 0.0 }
 0x225   : > { %v2344_v39 = vadd.f32 %v2343_v5, %v2342_v48  ;;  %v2444_v31 = vadd.f32 %v2443_v44, %v2442_v30 }
 0x227   : > { %v2346_v18 = vadd.f32 %v2345_v41, %v2344_v39  ;;  %v2446_v55 = vadd.f32 %v2445_v34, %v2444_v31 }
 0x229   : > { %v2448_v40 = vadd.f32 %v2447_v33, %v2446_v55 }
 0x236   : > { %v2774_v17 = vpop.f32.mrb[0].mxu1 }
 0x237   : > { %v2717_v9 = vpack.c.bf16 %v2774_v17, %v2774_v17  ;;  %v2092_v4 = vpop.f32.mrb[1].mxu1  ;;  %v2404_v47 = vmul.f32 %v2774_v17, %v2774_v17  ;;  %v2351_v43 = vsel %vm218_vm0, %v2774_v17, 0.0 }
 0x238   : > { %v2715_v42 = vpack.c.bf16 %v2092_v4, %v2092_v4  ;;  %v2347_v61 = vsel %vm218_vm0, %v2092_v4, 0.0  ;;  %v2402_v12 = vmul.f32 %v2092_v4, %v2092_v4  ;;  %v2775_v21 = vpop.f32.mrb[2].mxu1 }
 0x239   : > { %2302 = vst.msk [vmem:[%s4648_s7 + $0x48] sm:$0xf] %vm2283_vm12, %v2717_v9  ;;  %v2348_v20 = vadd.f32 %v2347_v61, %v2346_v18  ;;  %v2718_v8 = vpack.c.bf16 %v2775_v21, %v2775_v21  ;;  %v2095_v28 = vpop.f32.mrb[3].mxu1  ;;  %v2405_v29 = vmul.f32 %v2775_v21, %v2775_v21  ;;  %v2353_v23 = vsel %vm218_vm0, %v2775_v21, 0.0 }
 0x23a   : > { %2300 = vst.msk [vmem:[%s4648_s7 + $0x40] sm:$0xf] %vm2283_vm12, %v2715_v42  ;;  %v2449_v19 = vsel %vm218_vm0, %v2402_v12, 0.0  ;;  %v2716_v7 = vpack.c.bf16 %v2095_v28, %v2095_v28  ;;  %v2349_v57 = vsel %vm218_vm0, %v2095_v28, 0.0  ;;  %v2403_v45 = vmul.f32 %v2095_v28, %v2095_v28 }
 0x23b   : > { %v2450_v13 = vadd.f32 %v2449_v19, %v2448_v40  ;;  %2303 = vst.msk [vmem:[%s4648_s7 + $0x4c] sm:$0xf] %vm2283_vm12, %v2718_v8  ;;  %v2350_v32 = vadd.f32 %v2349_v57, %v2348_v20  ;;  %v2453_v16 = vsel %vm218_vm0, %v2404_v47, 0.0  ;;  %v2455_v27 = vsel %vm218_vm0, %v2405_v29, 0.0 }
 0x23c   : > { %2301 = vst.msk [vmem:[%s4648_s7 + $0x44] sm:$0xf] %vm2283_vm12, %v2716_v7  ;;  %v2451_v2 = vsel %vm218_vm0, %v2403_v45, 0.0 }
 0x23d   : > { %v2352_v11 = vadd.f32 %v2351_v43, %v2350_v32  ;;  %v2452_v15 = vadd.f32 %v2451_v2, %v2450_v13 }
 0x23f   : > { %v2354_v14 = vadd.f32 %v2353_v23, %v2352_v11  ;;  %v2454_v10 = vadd.f32 %v2453_v16, %v2452_v15 }
 0x241   : > { %v2456_v3 = vadd.f32 %v2455_v27, %v2454_v10 }
 0x24e   : > { %v2778_v49 = vpop.f32.mrb[4].mxu1 }
 0x24f   : > { %v2721_v25 = vpack.c.bf16 %v2778_v49, %v2778_v49  ;;  %v2108_v59 = vpop.f32.mrb[5].mxu1  ;;  %v2408_v54 = vmul.f32 %v2778_v49, %v2778_v49  ;;  %v2359_v63 = vsel %vm218_vm0, %v2778_v49, 0.0 }
 0x250   : > { %v2719_v38 = vpack.c.bf16 %v2108_v59, %v2108_v59  ;;  %v2355_v22 = vsel %vm218_vm0, %v2108_v59, 0.0  ;;  %v2406_v52 = vmul.f32 %v2108_v59, %v2108_v59  ;;  %v2779_v24 = vpop.f32.mrb[6].mxu1 }
 0x251   : > { %2306 = vst.msk [vmem:[%s4648_s7 + $0x58] sm:$0xf] %vm2283_vm12, %v2721_v25  ;;  %v2356_v36 = vadd.f32 %v2355_v22, %v2354_v14  ;;  %v2722_v60 = vpack.c.bf16 %v2779_v24, %v2779_v24  ;;  %v2111_v62 = vpop.f32.mrb[7].mxu1  ;;  %v2409_v1 = vmul.f32 %v2779_v24, %v2779_v24  ;;  %v2361_v37 = vsel %vm218_vm0, %v2779_v24, 0.0 }
 0x252   : > { %2304 = vst.msk [vmem:[%s4648_s7 + $0x50] sm:$0xf] %vm2283_vm12, %v2719_v38  ;;  %v2457_v50 = vsel %vm218_vm0, %v2406_v52, 0.0  ;;  %v2720_v46 = vpack.c.bf16 %v2111_v62, %v2111_v62  ;;  %v2357_v58 = vsel %vm218_vm0, %v2111_v62, 0.0  ;;  %v2407_v53 = vmul.f32 %v2111_v62, %v2111_v62 }
 0x253   : > { %v2458_v56 = vadd.f32 %v2457_v50, %v2456_v3  ;;  %2307 = vst.msk [vmem:[%s4648_s7 + $0x5c] sm:$0xf] %vm2283_vm12, %v2722_v60  ;;  %v2358_v35 = vadd.f32 %v2357_v58, %v2356_v36  ;;  %v2461_v48 = vsel %vm218_vm0, %v2408_v54, 0.0  ;;  %v2463_v6 = vsel %vm218_vm0, %v2409_v1, 0.0 }
 0x254   : > { %2305 = vst.msk [vmem:[%s4648_s7 + $0x54] sm:$0xf] %vm2283_vm12, %v2720_v46  ;;  %v2459_v51 = vsel %vm218_vm0, %v2407_v53, 0.0 }
 0x255   : > { %v2360_v26 = vadd.f32 %v2359_v63, %v2358_v35  ;;  %v2460_v30 = vadd.f32 %v2459_v51, %v2458_v56 }
 0x257   : > { %v2362_v0 = vadd.f32 %v2361_v37, %v2360_v26  ;;  %v2462_v5 = vadd.f32 %v2461_v48, %v2460_v30 }
 0x259   : > { %v2464_v39 = vadd.f32 %v2463_v6, %v2462_v5 }
 0x266   : > { %v2782_v44 = vpop.f32.mrb[8].mxu1 }
 0x267   : > { %v2725_v41 = vpack.c.bf16 %v2782_v44, %v2782_v44  ;;  %v2124_v31 = vpop.f32.mrb[9].mxu1  ;;  %v2412_v12 = vmul.f32 %v2782_v44, %v2782_v44  ;;  %v2367_v28 = vsel %vm218_vm0, %v2782_v44, 0.0 }
 0x268   : > { %v2723_v34 = vpack.c.bf16 %v2124_v31, %v2124_v31  ;;  %v2363_v18 = vsel %vm218_vm0, %v2124_v31, 0.0  ;;  %v2410_v55 = vmul.f32 %v2124_v31, %v2124_v31  ;;  %v2783_v33 = vpop.f32.mrb[10].mxu1 }
 0x269   : > { %2310 = vst.msk [vmem:[%s4648_s7 + $0x68] sm:$0xf] %vm2283_vm12, %v2725_v41  ;;  %v2364_v40 = vadd.f32 %v2363_v18, %v2362_v0  ;;  %v2726_v17 = vpack.c.bf16 %v2783_v33, %v2783_v33  ;;  %v2127_v9 = vpop.f32.mrb[11].mxu1  ;;  %v2413_v19 = vmul.f32 %v2783_v33, %v2783_v33  ;;  %v2369_v47 = vsel %vm218_vm0, %v2783_v33, 0.0 }
 0x26a   : > { %2308 = vst.msk [vmem:[%s4648_s7 + $0x60] sm:$0xf] %vm2283_vm12, %v2723_v34  ;;  %v2465_v4 = vsel %vm218_vm0, %v2410_v55, 0.0  ;;  %v2724_v42 = vpack.c.bf16 %v2127_v9, %v2127_v9  ;;  %v2365_v61 = vsel %vm218_vm0, %v2127_v9, 0.0  ;;  %v2411_v8 = vmul.f32 %v2127_v9, %v2127_v9 }
 0x26b   : > { %v2466_v21 = vadd.f32 %v2465_v4, %v2464_v39  ;;  %2311 = vst.msk [vmem:[%s4648_s7 + $0x6c] sm:$0xf] %vm2283_vm12, %v2726_v17  ;;  %v2366_v20 = vadd.f32 %v2365_v61, %v2364_v40  ;;  %v2469_v32 = vsel %vm218_vm0, %v2412_v12, 0.0  ;;  %v2471_v29 = vsel %vm218_vm0, %v2413_v19, 0.0 }
 0x26c   : > { %2309 = vst.msk [vmem:[%s4648_s7 + $0x64] sm:$0xf] %vm2283_vm12, %v2724_v42  ;;  %v2467_v57 = vsel %vm218_vm0, %v2411_v8, 0.0 }
 0x26d   : > { %v2368_v7 = vadd.f32 %v2367_v28, %v2366_v20  ;;  %v2468_v13 = vadd.f32 %v2467_v57, %v2466_v21 }
 0x26f   : > { %v2370_v45 = vadd.f32 %v2369_v47, %v2368_v7  ;;  %v2470_v43 = vadd.f32 %v2469_v32, %v2468_v13 }
 0x271   : > { %v2472_v11 = vadd.f32 %v2471_v29, %v2470_v43 }
 0x27e   : > { %v2786_v2 = vpop.f32.mrb[12].mxu1 }
 0x27f   : > { %v2729_v23 = vpack.c.bf16 %v2786_v2, %v2786_v2  ;;  %v2140_v15 = vpop.f32.mrb[13].mxu1  ;;  %v2416_v52 = vmul.f32 %v2786_v2, %v2786_v2  ;;  %v2375_v62 = vsel %vm218_vm0, %v2786_v2, 0.0 }
 0x280   : > { %v2727_v16 = vpack.c.bf16 %v2140_v15, %v2140_v15  ;;  %v2371_v14 = vsel %vm218_vm0, %v2140_v15, 0.0  ;;  %v2414_v10 = vmul.f32 %v2140_v15, %v2140_v15  ;;  %v2787_v27 = vpop.f32.mrb[14].mxu1 }
 0x281   : > { %2314 = vst.msk [vmem:[%s4648_s7 + $0x78] sm:$0xf] %vm2283_vm12, %v2729_v23  ;;  %v2372_v3 = vadd.f32 %v2371_v14, %v2370_v45  ;;  %v2730_v49 = vpack.c.bf16 %v2787_v27, %v2787_v27  ;;  %v2143_v25 = vpop.f32.mrb[15].mxu1  ;;  %v2417_v50 = vmul.f32 %v2787_v27, %v2787_v27  ;;  %v2377_v54 = vsel %vm218_vm0, %v2787_v27, 0.0 }
 0x282   : > { %2312 = vst.msk [vmem:[%s4648_s7 + $0x70] sm:$0xf] %vm2283_vm12, %v2727_v16  ;;  %v2473_v59 = vsel %vm218_vm0, %v2414_v10, 0.0  ;;  %v2728_v38 = vpack.c.bf16 %v2143_v25, %v2143_v25  ;;  %v2373_v22 = vsel %vm218_vm0, %v2143_v25, 0.0  ;;  %v2415_v60 = vmul.f32 %v2143_v25, %v2143_v25 }
 0x283   : > { %v2474_v24 = vadd.f32 %v2473_v59, %v2472_v11  ;;  %2315 = vst.msk [vmem:[%s4648_s7 + $0x7c] sm:$0xf] %vm2283_vm12, %v2730_v49  ;;  %v2374_v36 = vadd.f32 %v2373_v22, %v2372_v3  ;;  %v2477_v35 = vsel %vm218_vm0, %v2416_v52, 0.0  ;;  %v2479_v1 = vsel %vm218_vm0, %v2417_v50, 0.0 }
 0x284   : > { %2313 = vst.msk [vmem:[%s4648_s7 + $0x74] sm:$0xf] %vm2283_vm12, %v2728_v38  ;;  %v2475_v58 = vsel %vm218_vm0, %v2415_v60, 0.0 }
 0x285   : > { %v2376_v46 = vadd.f32 %v2375_v62, %v2374_v36  ;;  %v2476_v56 = vadd.f32 %v2475_v58, %v2474_v24 }
 0x287   : > { %v2378_v53 = vadd.f32 %v2377_v54, %v2376_v46  ;;  %v2478_v63 = vadd.f32 %v2477_v35, %v2476_v56 }
 0x289   : > { %v2379_v26 = vrot.slane %v2378_v53, 4  ;;  %v2480_v51 = vadd.f32 %v2479_v1, %v2478_v63 }
 0x28b   : > { %v2380_v37 = vadd.f32 %v2379_v26, %v2378_v53  ;;  %v2481_v30 = vrot.slane %v2480_v51, 4 }
 0x28d   : > { %v2381_v48 = vrot.slane %v2380_v37, 2  ;;  %v2482_v0 = vadd.f32 %v2481_v30, %v2480_v51 }
 0x28f   : > { %v2382_v5 = vadd.f32 %v2381_v48, %v2380_v37  ;;  %v2483_v6 = vrot.slane %v2482_v0, 2 }
 0x291   : > { %v2383_v39 = vrot.slane %v2382_v5, 1  ;;  %v2484_v44 = vadd.f32 %v2483_v6, %v2482_v0 }
 0x293   : > { %v2384_v41 = vadd.f32 %v2383_v39, %v2382_v5  ;;  %v2485_v31 = vrot.slane %v2484_v44, 1 }
 0x295   : > { %2385 = vst.msk [vmem:[%s200_s9] sm:$0x1] %vm227_vm2, %v2384_v41 }
 0x296   : > { %3516 = shalt.err (!%p3513_p3)
}
 0x297   : > { %s3517_s7 = scalar_lea.hbm %s4789_s20, 16  ;;  %s3521_s13 = scalar_lea.hbm %s4868_s3, 32 }
 0x298   : > { %p3518_p4 = scmp.ne.s32.totalorder %s4789_s20, %s3517_s7  ;;  %p3522_p9 = scmp.lt.u32.totalorder %s4789_s20, %s4868_s3 }
 0x299   : > { %p3523_p10 = scmp.lt.u32.totalorder %s3521_s13, %s3517_s7  ;;  %p3525_p12 = scmp.lt.u32.totalorder %s3517_s7, %s4789_s20 }
 0x29a   : > { %p3519_p7 = pnand %p3518_p4, %p3673_p5 }
 0x29b   : > { %p3524_p11 = por %p3523_p10, %p3522_p9 }
 0x29c   : > { %p3520_p8 = pneg %p3519_p7 }
 0x29d   : > { %p3526_p13 = por %p3525_p12, %p3524_p11 }
 0x29f   : > { %p3527_p0 = pnand %p3526_p13, %p3520_p8 }
 0x2a1   : > { %3530 = shalt.err (!%p3527_p0)
}
 0x2a2   : > { %2796 = dma.vmem_to_hbm [thread:$0]  (%p3673_p5), %s4791_s10, 16, %s4789_s20, %s2494_s28   ;;  %v2486_v34 = vadd.f32 %v2485_v31, %v2484_v44 }
 0x2a3   : > { %s2498_s22 = scalar_lea.sflag [#allocation6], %s4779_s27  ;;  %s3531_s29 = scalar_lea.vmem %s4799_s12, 16 }
 0x2a4   : > { %2487 = vst.msk [vmem:[%s206_s11] sm:$0x1] %vm227_vm2, %v2486_v34  ;;  %p3532_p1 = scmp.ne.s32.totalorder %s4799_s12, %s3531_s29  ;;  %s3609_s30 = smov [#allocation5]  }
 0x2a5   : > { %s3535_s5 = sshll.u32 %s3609_s30, 4  ;;  %s3536_s5 = int_to_ptr.vmem [resolvable:$false] %s3535_s5 }
 0x2a6   : > { %p3533_p2 = pnand %p3532_p1, %p3673_p5  ;;  %s3537_s6 = scalar_lea.vmem %s3536_s5, 32 }
 0x2a7   : > { %p3538_p4 = scmp.lt.s32.totalorder %s4799_s12, %s3536_s5  ;;  %p3539_p7 = scmp.lt.s32.totalorder %s3537_s6, %s3531_s29 }
 0x2a8   : > { %p3534_p3 = pneg %p3533_p2 }
 0x2a9   : > { %p3540_p8 = por %p3539_p7, %p3538_p4 }
 0x2ab   : > { %p3541_p9 = pnand %p3540_p8, %p3534_p3 }
 0x2ad   : > { %3544 = shalt.err (!%p3541_p9)
}
 0x2ae   : > { %s3545_s27 = scalar_lea.hbm %s4797_s23, 16  ;;  %s3549_s20 = scalar_lea.hbm %s4869_s4, 32 }
 0x2af   : > { %p3546_p10 = scmp.ne.s32.totalorder %s4797_s23, %s3545_s27  ;;  %p3550_p13 = scmp.lt.u32.totalorder %s4797_s23, %s4869_s4 }
 0x2b0   : > { %p3551_p0 = scmp.lt.u32.totalorder %s3549_s20, %s3545_s27  ;;  %p3553_p2 = scmp.lt.u32.totalorder %s3545_s27, %s4797_s23 }
 0x2b1   : > { %p3547_p11 = pnand %p3546_p10, %p3673_p5 }
 0x2b2   : > { %p3552_p1 = por %p3551_p0, %p3550_p13 }
 0x2b3   : > { %p3548_p12 = pneg %p3547_p11 }
 0x2b4   : > { %p3554_p3 = por %p3553_p2, %p3552_p1 }
 0x2b6   : > { %p3555_p4 = pnand %p3554_p3, %p3548_p12 }
 0x2b8   : > { %3558 = shalt.err (!%p3555_p4)
}
 0x2b9   : > { %2797 = dma.vmem_to_hbm [thread:$0]  (%p3673_p5), %s4799_s12, 16, %s4797_s23, %s2498_s22  }
 0x2ba PF: > { %p2807_p7 = scmp.ge.s32.totalorder %s3597_s18, 2  ;;  %s2546_s8 = sand.u32 1, %s3585_s15  }
 0x2bb   : > { %s2547_s9 = scalar_lea.sflag [#allocation4], %s2546_s8 }
 0x2bc   : > { %p2801_p8 = pnand %p2807_p7, %p3677_p6 }
 0x2be   : > { %3576 = dma.done.wait (!%p2801_p8), %s2547_s9, 16  }
 0x2bf   : > { %3578 = vsyncadd (!%p2801_p8), %s2547_s9, 4294967280  ;;  %s2555_s13 = scalar_lea.sflag [#allocation6], %s2546_s8 }
 0x2c0   : > { %3580 = dma.done.wait (!%p2801_p8), %s2555_s13, 16  }
 0x2c1   : > { %3582 = vsyncadd (!%p2801_p8), %s2555_s13, 4294967280  ;;  %p18_p5 = scmp.ge.s32.totalorder %s3660_s21, 4   ;;  %s4928_s15 = smov %s3589_s16 }
 0x2c2   : > { %s4929_s16 = smov %s3593_s17  ;;  %s4930_s17 = smov %s3671_s24 }
 0x2c3   : > { %s4931_s18 = smov %s3660_s21  ;;  %20 = sbr.rel (!%p18_p5) target bundleno = 5 (0x5), region = 95 }
 0x2ca   :  { %2559 = vsyncpa [#allocation4], 1 }
 0x2cb   :  { %2561 = vsyncpa [#allocation4 + $0x1], 1 }
 0x2cc   :  { %2562 = vsyncpa [#allocation6], 1 }
 0x2cd   :  { %2564 = vsyncpa [#allocation6 + $0x1], 1 }

</bundles_post_ra>
